<compile_context>
chip_gen: v6e
topology: v6e:2x2x1
jax: 0.10.0
libtpu: 0.0.40
codegen_flags: <defaults>
</compile_context>

<pallas_src>
import functools
import numpy as np
import jax
import jax.numpy as jnp
from jax import lax
from jax.experimental import pallas as pl
from jax.experimental.pallas import tpu as pltpu

# ---------------- config (small, consistent with the module) ----------------
B = 2              # batch
S = 8              # decoder seq len == encoder seq len (reference broadcasts a (B,S,S) mask onto cross-attn scores)
VOCAB = 50         # input_dim
D = 32             # hidden_dim
N_HEADS = 4
HEAD_DIM = 8
HD = N_HEADS * HEAD_DIM
FF_DIM = 64
N_LAYERS = 2
MAX_SEQ_LEN = 16
PAD_ID = 0
EPS = 1e-12        # DecoderLayer(eps=1e-12) default in the reference


def _layer_norm(x, g, b):
    mu = jnp.mean(x, axis=-1, keepdims=True)
    var = jnp.mean(jnp.square(x - mu), axis=-1, keepdims=True)   # biased var, like nn.LayerNorm
    return (x - mu) * lax.rsqrt(var + EPS) * g + b


# ----------------------- fully fused decoder kernel --------------------------
def fused_decoder_kernel(tok_col_ref, tok_row_ref, enc_ref, emb_ref, pe_ref,
                         ln1g, ln1b, wq, bq, wkv, bkv, wo, bo,
                         ln2g, ln2b, w1, b1, w2, b2, ln3g, ln3b,
                         wc, bc, out_ref,
                         *, n_layers, n_heads, head_dim, pad_id):
    BS = tok_col_ref.shape[0]                 # B * S
    Bb, _, Ss = tok_row_ref.shape
    V, Dd = emb_ref.shape
    hd = head_dim
    HDd = n_heads * head_dim

    # ---- embedding via one-hot matmul (in-kernel gather) + positional encoding ----
    vocab_iota = lax.broadcasted_iota(jnp.int32, (BS, V), 1)
    onehot = (vocab_iota == tok_col_ref[...]).astype(jnp.float32)                 # (BS, V)
    x = jnp.dot(onehot, emb_ref[...], preferred_element_type=jnp.float32) + pe_ref[...]   # (BS, D)

    # ---- combined mask: key-padding OR look-ahead (True == masked).
    # Due to the reference's argument swap, this combined mask is what reaches the
    # (only effective) enc-dec cross attention.
    row_iota = lax.broadcasted_iota(jnp.int32, (Ss, Ss), 0)
    col_iota = lax.broadcasted_iota(jnp.int32, (Ss, Ss), 1)
    look_ahead = jnp.broadcast_to((col_iota > row_iota)[None, :, :], (Bb, Ss, Ss))
    pad_k = jnp.broadcast_to(tok_row_ref[...] == pad_id, (Bb, Ss, Ss))
    mask = jnp.logical_or(pad_k, look_ahead)                                      # (B, S, S) bool

    enc2 = enc_ref[...]                                                           # (BS, D)

    for l in range(n_layers):
        # NOTE: reference's masked_self_attn output is dead code (discarded) -> skipped.
        xn = _layer_norm(x, ln1g[l], ln1b[l])                                     # (BS, D)

        # fused projections; 1/sqrt(head_dim) already folded into wq / bq.
        q2 = jnp.dot(xn, wq[l], preferred_element_type=jnp.float32) + bq[l]       # (BS, HD)
        kv2 = jnp.dot(enc2, wkv[l], preferred_element_type=jnp.float32) + bkv[l]  # (BS, 2*HD)

        q3 = q2.reshape(Bb, Ss, HDd)
        kv3 = kv2.reshape(Bb, Ss, 2 * HDd)

        ctx_parts = []
        for h in range(n_heads):          # 4 static lane slices of projected activations
            lo = h * hd
            qh = q3[:, :, lo:lo + hd]                                             # (B, S, hd)
            kh = kv3[:, :, lo:lo + hd]
            vh = kv3[:, :, HDd + lo:HDd + lo + hd]
            s = jnp.einsum('bqd,bkd->bqk', qh, kh,
                           preferred_element_type=jnp.float32)                    # (B, S, S)
            s = jnp.where(mask, -1e9, s)                                          # masked_fill(-1e9)
            m = jnp.max(s, axis=-1, keepdims=True)
            e = jnp.exp(s - m)
            p = e / jnp.sum(e, axis=-1, keepdims=True)                            # softmax(dim=-1)
            ctx_parts.append(jnp.einsum('bqk,bkd->bqd', p, vh,
                                        preferred_element_type=jnp.float32))
        ctx = jnp.concatenate(ctx_parts, axis=-1).reshape(BS, HDd)                # (BS, HD)

        attn_out = jnp.dot(ctx, wo[l], preferred_element_type=jnp.float32) + bo[l]
        y = _layer_norm(attn_out, ln2g[l], ln2b[l])
        h1 = jnp.maximum(jnp.dot(y, w1[l], preferred_element_type=jnp.float32) + b1[l], 0.0)
        ff = jnp.dot(h1, w2[l], preferred_element_type=jnp.float32) + b2[l]
        x = _layer_norm(ff, ln3g[l], ln3b[l])                                     # (BS, D)

    # ---- classifier + log_softmax over dim=1 (the sequence axis, as in the reference) ----
    logits = (jnp.dot(x, wc[...], preferred_element_type=jnp.float32) + bc[...]).reshape(Bb, Ss, V)
    m = jnp.max(logits, axis=1, keepdims=True)
    lse = jnp.log(jnp.sum(jnp.exp(logits - m), axis=1, keepdims=True)) + m
    out_ref[...] = logits - lse


def decoder_forward(dec_input, enc_output, params):
    Bsz, Ssz = dec_input.shape

    # host-side glue: cheap reshapes/views only (no compute, no gathers)
    tok_col = dec_input.reshape(Bsz * Ssz, 1).astype(jnp.int32)          # token along sublanes
    tok_row = dec_input.reshape(Bsz, 1, Ssz).astype(jnp.int32)           # token along lanes (key axis)
    enc2 = enc_output.reshape(Bsz * Ssz, D).astype(jnp.float32)
    pe_bs = jnp.tile(params['pe_table'][:Ssz], (Bsz, 1))                 # (B*S, D)

    lw = params['stacked']
    inputs = [tok_col, tok_row, enc2, params['src_emb'], pe_bs,
              lw['ln1g'], lw['ln1b'], lw['wq'], lw['bq'], lw['wkv'], lw['bkv'],
              lw['wo'], lw['bo'], lw['ln2g'], lw['ln2b'],
              lw['w1'], lw['b1'], lw['w2'], lw['b2'], lw['ln3g'], lw['ln3b'],
              params['wc'], params['bc']]

    kernel = functools.partial(fused_decoder_kernel, n_layers=N_LAYERS,
                               n_heads=N_HEADS, head_dim=HEAD_DIM, pad_id=PAD_ID)

    return pl.pallas_call(
        kernel,
        out_shape=jax.ShapeDtypeStruct((Bsz, Ssz, VOCAB), jnp.float32),
        in_specs=[pl.BlockSpec(memory_space=pltpu.MemorySpace.VMEM)] * len(inputs),
        out_specs=pl.BlockSpec(memory_space=pltpu.MemorySpace.VMEM),
    )(*inputs)


# ------------------------------ parameters -----------------------------------
def init_params(key):
    keys = jax.random.split(key, 4 + N_LAYERS)
    params = {}
    # nn.Embedding default init ~ N(0, 1)
    params['src_emb'] = jax.random.normal(keys[0], (VOCAB, D), jnp.float32)

    # sinusoidal positional-encoding table (get_positional_encoding_table)
    pos = np.arange(MAX_SEQ_LEN)[:, None].astype(np.float64)
    i = np.arange(D)[None, :]
    angle = pos / np.power(10000.0, 2 * (i // 2) / D)
    pe = np.zeros((MAX_SEQ_LEN, D), dtype=np.float32)
    pe[:, 0::2] = np.sin(angle[:, 0::2])
    pe[:, 1::2] = np.cos(angle[:, 1::2])
    params['pe_table'] = jnp.asarray(pe)

    params['wc'] = (jax.random.normal(keys[1], (D, VOCAB)) * 0.1).astype(jnp.float32)
    params['bc'] = (jax.random.normal(keys[2], (1, VOCAB)) * 0.1).astype(jnp.float32)

    scale = HEAD_DIM ** 0.5
    per_layer = []
    for l in range(N_LAYERS):
        lk = jax.random.split(keys[4 + l], 12)
        wq = jax.random.normal(lk[0], (D, HD)) * 0.1
        bq = jax.random.normal(lk[1], (1, HD)) * 0.1
        wk = jax.random.normal(lk[2], (D, HD)) * 0.1
        bk = jax.random.normal(lk[3], (1, HD)) * 0.1
        wv = jax.random.normal(lk[4], (D, HD)) * 0.1
        bv = jax.random.normal(lk[5], (1, HD)) * 0.1
        lp = dict(
            ln1g=jnp.ones((1, D)), ln1b=jnp.zeros((1, D)),
            wq=wq / scale, bq=bq / scale,                         # fold 1/sqrt(head_dim) into Q proj
            wkv=jnp.concatenate([wk, wv], axis=1),                # fused K|V projection weight
            bkv=jnp.concatenate([bk, bv], axis=1),
            wo=jax.random.normal(lk[6], (HD, D)) * 0.1, bo=jax.random.normal(lk[7], (1, D)) * 0.1,
            ln2g=jnp.ones((1, D)), ln2b=jnp.zeros((1, D)),
            w1=jax.random.normal(lk[8], (D, FF_DIM)) * 0.1, b1=jax.random.normal(lk[9], (1, FF_DIM)) * 0.1,
            w2=jax.random.normal(lk[10], (FF_DIM, D)) * 0.1, b2=jax.random.normal(lk[11], (1, D)) * 0.1,
            ln3g=jnp.ones((1, D)), ln3b=jnp.zeros((1, D)),
        )
        per_layer.append({k: v.astype(jnp.float32) for k, v in lp.items()})

    # stack per-layer weights along a leading layer axis -> fewer kernel args,
    # static ref[l] indexing inside the kernel.
    params['stacked'] = {k: jnp.stack([lp[k] for lp in per_layer], axis=0)
                         for k in per_layer[0]}
    return params


if __name__ == "__main__":
    key = jax.random.PRNGKey(0)
    k_tok, k_enc, k_par = jax.random.split(key, 3)

    # deterministic example inputs
    dec_input = jax.random.randint(k_tok, (B, S), 1, VOCAB, dtype=jnp.int32)
    dec_input = dec_input.at[1, -2:].set(PAD_ID)                  # some pad tokens
    enc_output = jax.random.normal(k_enc, (B, S, D), jnp.float32)

    params = init_params(k_par)

    out = decoder_forward(dec_input, enc_output, params)          # (B, S, VOCAB) log-probs over dim=1
    out = jax.block_until_ready(out)

    assert out.shape == (B, S, VOCAB)
    assert bool(jnp.all(jnp.isfinite(out)))
    # log_softmax over dim=1: exp(out) should sum to 1 along the sequence axis
    assert bool(jnp.allclose(jnp.sum(jnp.exp(out), axis=1), 1.0, atol=1e-4))
    print("KERNEL_OK")
</pallas_src>

<mosaic_0001>
module attributes {stable_mosaic.version = 11 : i64} {
  func.func @fused_decoder_kernel(%arg0: memref<16x1xi32, #tpu.memory_space<vmem>>, %arg1: memref<2x1x8xi32, #tpu.memory_space<vmem>>, %arg2: memref<16x32xf32, #tpu.memory_space<vmem>>, %arg3: memref<50x32xf32, #tpu.memory_space<vmem>>, %arg4: memref<16x32xf32, #tpu.memory_space<vmem>>, %arg5: memref<2x1x32xf32, #tpu.memory_space<vmem>>, %arg6: memref<2x1x32xf32, #tpu.memory_space<vmem>>, %arg7: memref<2x32x32xf32, #tpu.memory_space<vmem>>, %arg8: memref<2x1x32xf32, #tpu.memory_space<vmem>>, %arg9: memref<2x32x64xf32, #tpu.memory_space<vmem>>, %arg10: memref<2x1x64xf32, #tpu.memory_space<vmem>>, %arg11: memref<2x32x32xf32, #tpu.memory_space<vmem>>, %arg12: memref<2x1x32xf32, #tpu.memory_space<vmem>>, %arg13: memref<2x1x32xf32, #tpu.memory_space<vmem>>, %arg14: memref<2x1x32xf32, #tpu.memory_space<vmem>>, %arg15: memref<2x32x64xf32, #tpu.memory_space<vmem>>, %arg16: memref<2x1x64xf32, #tpu.memory_space<vmem>>, %arg17: memref<2x64x32xf32, #tpu.memory_space<vmem>>, %arg18: memref<2x1x32xf32, #tpu.memory_space<vmem>>, %arg19: memref<2x1x32xf32, #tpu.memory_space<vmem>>, %arg20: memref<2x1x32xf32, #tpu.memory_space<vmem>>, %arg21: memref<32x50xf32, #tpu.memory_space<vmem>>, %arg22: memref<1x50xf32, #tpu.memory_space<vmem>>, %arg23: memref<2x8x50xf32, #tpu.memory_space<vmem>>) attributes {dimension_semantics = [], scalar_prefetch = 0 : i64, scratch_operands = 0 : i64, tpu.core_type = #tpu.core_type<tc>} {
    %0 = tpu.iota {dimensions = array<i32: 1>} : vector<16x50xi32>
    %c0 = arith.constant 0 : index
    %c0_0 = arith.constant 0 : index
    %1 = vector.load %arg0[%c0, %c0_0] : memref<16x1xi32, #tpu.memory_space<vmem>>, vector<16x1xi32>
    %2 = vector.broadcast %1 : vector<16x1xi32> to vector<16x50xi32>
    %3 = arith.cmpi eq, %0, %2 : vector<16x50xi32>
    %4 = arith.extui %3 : vector<16x50xi1> to vector<16x50xi32>
    %5 = arith.sitofp %4 : vector<16x50xi32> to vector<16x50xf32>
    %c0_1 = arith.constant 0 : index
    %c0_2 = arith.constant 0 : index
    %6 = vector.load %arg3[%c0_1, %c0_2] : memref<50x32xf32, #tpu.memory_space<vmem>>, vector<50x32xf32>
    %cst = arith.constant dense<0.000000e+00> : vector<16x32xf32>
    %7 = tpu.matmul %5, %6, %cst {dimension_numbers = #tpu.dot_dimension_numbers<[1], [0], [0], [1], [0, 0, 1, 1], [], []>} : vector<16x50xf32>, vector<50x32xf32>, vector<16x32xf32> -> vector<16x32xf32>
    %c0_3 = arith.constant 0 : index
    %c0_4 = arith.constant 0 : index
    %8 = vector.load %arg4[%c0_3, %c0_4] : memref<16x32xf32, #tpu.memory_space<vmem>>, vector<16x32xf32>
    %9 = arith.addf %7, %8 : vector<16x32xf32>
    %10 = tpu.iota {dimensions = array<i32: 0>} : vector<8x8xi32>
    %11 = tpu.iota {dimensions = array<i32: 1>} : vector<8x8xi32>
    %12 = arith.cmpi sgt, %11, %10 : vector<8x8xi32>
    %13 = vector.shape_cast %12 : vector<8x8xi1> to vector<1x8x8xi1>
    %14 = vector.shape_cast %13 : vector<1x8x8xi1> to vector<1x8x8xi1>
    %15 = vector.broadcast %14 : vector<1x8x8xi1> to vector<2x8x8xi1>
    %c0_5 = arith.constant 0 : index
    %c0_6 = arith.constant 0 : index
    %c0_7 = arith.constant 0 : index
    %16 = vector.load %arg1[%c0_5, %c0_6, %c0_7] : memref<2x1x8xi32, #tpu.memory_space<vmem>>, vector<2x1x8xi32>
    %c0_i32 = arith.constant 0 : i32
    %17 = vector.broadcast %c0_i32 : i32 to vector<2x1x8xi32>
    %18 = arith.cmpi eq, %16, %17 : vector<2x1x8xi32>
    %19 = vector.shape_cast %18 : vector<2x1x8xi1> to vector<2x1x8xi1>
    %20 = vector.broadcast %19 : vector<2x1x8xi1> to vector<2x8x8xi1>
    %21 = arith.ori %20, %15 : vector<2x8x8xi1>
    %c0_8 = arith.constant 0 : index
    %c0_9 = arith.constant 0 : index
    %22 = vector.load %arg2[%c0_8, %c0_9] : memref<16x32xf32, #tpu.memory_space<vmem>>, vector<16x32xf32>
    %c0_10 = arith.constant 0 : index
    %c0_11 = arith.constant 0 : index
    %c0_12 = arith.constant 0 : index
    %23 = vector.load %arg5[%c0_10, %c0_11, %c0_12] : memref<2x1x32xf32, #tpu.memory_space<vmem>>, vector<1x1x32xf32>
    %24 = vector.shape_cast %23 : vector<1x1x32xf32> to vector<1x32xf32>
    %c0_13 = arith.constant 0 : index
    %c0_14 = arith.constant 0 : index
    %c0_15 = arith.constant 0 : index
    %25 = vector.load %arg6[%c0_13, %c0_14, %c0_15] : memref<2x1x32xf32, #tpu.memory_space<vmem>>, vector<1x1x32xf32>
    %26 = vector.shape_cast %25 : vector<1x1x32xf32> to vector<1x32xf32>
    %cst_16 = arith.constant dense<0.000000e+00> : vector<16xf32>
    %27 = vector.multi_reduction <add>, %9, %cst_16 [1] : vector<16x32xf32> to vector<16xf32>
    %28 = vector.shape_cast %27 : vector<16xf32> to vector<16x1xf32>
    %cst_17 = arith.constant 3.200000e+01 : f32
    %29 = vector.broadcast %cst_17 : f32 to vector<16x1xf32>
    %30 = arith.divf %28, %29 : vector<16x1xf32>
    %31 = vector.broadcast %30 : vector<16x1xf32> to vector<16x32xf32>
    %32 = arith.subf %9, %31 : vector<16x32xf32>
    %33 = arith.mulf %32, %32 : vector<16x32xf32>
    %cst_18 = arith.constant dense<0.000000e+00> : vector<16xf32>
    %34 = vector.multi_reduction <add>, %33, %cst_18 [1] : vector<16x32xf32> to vector<16xf32>
    %35 = vector.shape_cast %34 : vector<16xf32> to vector<16x1xf32>
    %cst_19 = arith.constant 3.200000e+01 : f32
    %36 = vector.broadcast %cst_19 : f32 to vector<16x1xf32>
    %37 = arith.divf %35, %36 : vector<16x1xf32>
    %38 = vector.broadcast %30 : vector<16x1xf32> to vector<16x32xf32>
    %39 = arith.subf %9, %38 : vector<16x32xf32>
    %cst_20 = arith.constant 9.99999996E-13 : f32
    %40 = vector.broadcast %cst_20 : f32 to vector<16x1xf32>
    %41 = arith.addf %37, %40 : vector<16x1xf32>
    %42 = math.rsqrt %41 : vector<16x1xf32>
    %43 = vector.broadcast %42 : vector<16x1xf32> to vector<16x32xf32>
    %44 = arith.mulf %39, %43 : vector<16x32xf32>
    %45 = vector.broadcast %24 : vector<1x32xf32> to vector<16x32xf32>
    %46 = arith.mulf %44, %45 : vector<16x32xf32>
    %47 = vector.broadcast %26 : vector<1x32xf32> to vector<16x32xf32>
    %48 = arith.addf %46, %47 : vector<16x32xf32>
    %c0_21 = arith.constant 0 : index
    %c0_22 = arith.constant 0 : index
    %c0_23 = arith.constant 0 : index
    %49 = vector.load %arg7[%c0_21, %c0_22, %c0_23] : memref<2x32x32xf32, #tpu.memory_space<vmem>>, vector<1x32x32xf32>
    %50 = vector.shape_cast %49 : vector<1x32x32xf32> to vector<32x32xf32>
    %cst_24 = arith.constant dense<0.000000e+00> : vector<16x32xf32>
    %51 = tpu.matmul %48, %50, %cst_24 {dimension_numbers = #tpu.dot_dimension_numbers<[1], [0], [0], [1], [0, 0, 1, 1], [], []>} : vector<16x32xf32>, vector<32x32xf32>, vector<16x32xf32> -> vector<16x32xf32>
    %c0_25 = arith.constant 0 : index
    %c0_26 = arith.constant 0 : index
    %c0_27 = arith.constant 0 : index
    %52 = vector.load %arg8[%c0_25, %c0_26, %c0_27] : memref<2x1x32xf32, #tpu.memory_space<vmem>>, vector<1x1x32xf32>
    %53 = vector.shape_cast %52 : vector<1x1x32xf32> to vector<1x32xf32>
    %54 = vector.broadcast %53 : vector<1x32xf32> to vector<16x32xf32>
    %55 = arith.addf %51, %54 : vector<16x32xf32>
    %c0_28 = arith.constant 0 : index
    %c0_29 = arith.constant 0 : index
    %c0_30 = arith.constant 0 : index
    %56 = vector.load %arg9[%c0_28, %c0_29, %c0_30] : memref<2x32x64xf32, #tpu.memory_space<vmem>>, vector<1x32x64xf32>
    %57 = vector.shape_cast %56 : vector<1x32x64xf32> to vector<32x64xf32>
    %cst_31 = arith.constant dense<0.000000e+00> : vector<16x64xf32>
    %58 = tpu.matmul %22, %57, %cst_31 {dimension_numbers = #tpu.dot_dimension_numbers<[1], [0], [0], [1], [0, 0, 1, 1], [], []>} : vector<16x32xf32>, vector<32x64xf32>, vector<16x64xf32> -> vector<16x64xf32>
    %c0_32 = arith.constant 0 : index
    %c0_33 = arith.constant 0 : index
    %c0_34 = arith.constant 0 : index
    %59 = vector.load %arg10[%c0_32, %c0_33, %c0_34] : memref<2x1x64xf32, #tpu.memory_space<vmem>>, vector<1x1x64xf32>
    %60 = vector.shape_cast %59 : vector<1x1x64xf32> to vector<1x64xf32>
    %61 = vector.broadcast %60 : vector<1x64xf32> to vector<16x64xf32>
    %62 = arith.addf %58, %61 : vector<16x64xf32>
    %63 = vector.shape_cast %55 : vector<16x32xf32> to vector<2x8x32xf32>
    %64 = vector.shape_cast %62 : vector<16x64xf32> to vector<2x8x64xf32>
    %65 = vector.extract_strided_slice %63 {offsets = [0, 0, 0], sizes = [2, 8, 8], strides = [1, 1, 1]} : vector<2x8x32xf32> to vector<2x8x8xf32>
    %66 = vector.extract_strided_slice %64 {offsets = [0, 0, 0], sizes = [2, 8, 8], strides = [1, 1, 1]} : vector<2x8x64xf32> to vector<2x8x8xf32>
    %67 = vector.extract_strided_slice %64 {offsets = [0, 0, 32], sizes = [2, 8, 8], strides = [1, 1, 1]} : vector<2x8x64xf32> to vector<2x8x8xf32>
    "tpu.trace_start"() <{level = 10 : i32, message = "bqd,bkd->bqk"}> : () -> ()
    %cst_35 = arith.constant dense<0.000000e+00> : vector<2x8x8xf32>
    %68 = tpu.matmul %65, %66, %cst_35 {dimension_numbers = #tpu.dot_dimension_numbers<[2], [2], [1], [1], [0, 0, 0, 1, 1, 1], [0], [0]>} : vector<2x8x8xf32>, vector<2x8x8xf32>, vector<2x8x8xf32> -> vector<2x8x8xf32>
    %cst_36 = arith.constant -1.000000e+09 : f32
    "tpu.trace_stop"() : () -> ()
    %69 = vector.broadcast %cst_36 : f32 to vector<2x8x8xf32>
    %70 = arith.select %21, %69, %68 : vector<2x8x8xi1>, vector<2x8x8xf32>
    %cst_37 = arith.constant dense<0xFF800000> : vector<2x8xf32>
    %71 = vector.multi_reduction <maximumf>, %70, %cst_37 [2] : vector<2x8x8xf32> to vector<2x8xf32>
    %72 = vector.shape_cast %71 : vector<2x8xf32> to vector<2x8x1xf32>
    %73 = vector.broadcast %72 : vector<2x8x1xf32> to vector<2x8x8xf32>
    %74 = arith.subf %70, %73 : vector<2x8x8xf32>
    %75 = math.exp %74 : vector<2x8x8xf32>
    %cst_38 = arith.constant dense<0.000000e+00> : vector<2x8xf32>
    %76 = vector.multi_reduction <add>, %75, %cst_38 [2] : vector<2x8x8xf32> to vector<2x8xf32>
    %77 = vector.shape_cast %76 : vector<2x8xf32> to vector<2x8x1xf32>
    %78 = vector.broadcast %77 : vector<2x8x1xf32> to vector<2x8x8xf32>
    %79 = arith.divf %75, %78 : vector<2x8x8xf32>
    "tpu.trace_start"() <{level = 10 : i32, message = "bqk,bkd->bqd"}> : () -> ()
    %cst_39 = arith.constant dense<0.000000e+00> : vector<2x8x8xf32>
    %80 = tpu.matmul %79, %67, %cst_39 {dimension_numbers = #tpu.dot_dimension_numbers<[2], [1], [1], [2], [0, 0, 0, 1, 1, 2], [0], [0]>} : vector<2x8x8xf32>, vector<2x8x8xf32>, vector<2x8x8xf32> -> vector<2x8x8xf32>
    "tpu.trace_stop"() : () -> ()
    %81 = vector.extract_strided_slice %63 {offsets = [0, 0, 8], sizes = [2, 8, 8], strides = [1, 1, 1]} : vector<2x8x32xf32> to vector<2x8x8xf32>
    %82 = vector.extract_strided_slice %64 {offsets = [0, 0, 8], sizes = [2, 8, 8], strides = [1, 1, 1]} : vector<2x8x64xf32> to vector<2x8x8xf32>
    %83 = vector.extract_strided_slice %64 {offsets = [0, 0, 40], sizes = [2, 8, 8], strides = [1, 1, 1]} : vector<2x8x64xf32> to vector<2x8x8xf32>
    "tpu.trace_start"() <{level = 10 : i32, message = "bqd,bkd->bqk"}> : () -> ()
    %cst_40 = arith.constant dense<0.000000e+00> : vector<2x8x8xf32>
    %84 = tpu.matmul %81, %82, %cst_40 {dimension_numbers = #tpu.dot_dimension_numbers<[2], [2], [1], [1], [0, 0, 0, 1, 1, 1], [0], [0]>} : vector<2x8x8xf32>, vector<2x8x8xf32>, vector<2x8x8xf32> -> vector<2x8x8xf32>
    %cst_41 = arith.constant -1.000000e+09 : f32
    "tpu.trace_stop"() : () -> ()
    %85 = vector.broadcast %cst_41 : f32 to vector<2x8x8xf32>
    %86 = arith.select %21, %85, %84 : vector<2x8x8xi1>, vector<2x8x8xf32>
    %cst_42 = arith.constant dense<0xFF800000> : vector<2x8xf32>
    %87 = vector.multi_reduction <maximumf>, %86, %cst_42 [2] : vector<2x8x8xf32> to vector<2x8xf32>
    %88 = vector.shape_cast %87 : vector<2x8xf32> to vector<2x8x1xf32>
    %89 = vector.broadcast %88 : vector<2x8x1xf32> to vector<2x8x8xf32>
    %90 = arith.subf %86, %89 : vector<2x8x8xf32>
    %91 = math.exp %90 : vector<2x8x8xf32>
    %cst_43 = arith.constant dense<0.000000e+00> : vector<2x8xf32>
    %92 = vector.multi_reduction <add>, %91, %cst_43 [2] : vector<2x8x8xf32> to vector<2x8xf32>
    %93 = vector.shape_cast %92 : vector<2x8xf32> to vector<2x8x1xf32>
    %94 = vector.broadcast %93 : vector<2x8x1xf32> to vector<2x8x8xf32>
    %95 = arith.divf %91, %94 : vector<2x8x8xf32>
    "tpu.trace_start"() <{level = 10 : i32, message = "bqk,bkd->bqd"}> : () -> ()
    %cst_44 = arith.constant dense<0.000000e+00> : vector<2x8x8xf32>
    %96 = tpu.matmul %95, %83, %cst_44 {dimension_numbers = #tpu.dot_dimension_numbers<[2], [1], [1], [2], [0, 0, 0, 1, 1, 2], [0], [0]>} : vector<2x8x8xf32>, vector<2x8x8xf32>, vector<2x8x8xf32> -> vector<2x8x8xf32>
    "tpu.trace_stop"() : () -> ()
    %97 = vector.extract_strided_slice %63 {offsets = [0, 0, 16], sizes = [2, 8, 8], strides = [1, 1, 1]} : vector<2x8x32xf32> to vector<2x8x8xf32>
    %98 = vector.extract_strided_slice %64 {offsets = [0, 0, 16], sizes = [2, 8, 8], strides = [1, 1, 1]} : vector<2x8x64xf32> to vector<2x8x8xf32>
    %99 = vector.extract_strided_slice %64 {offsets = [0, 0, 48], sizes = [2, 8, 8], strides = [1, 1, 1]} : vector<2x8x64xf32> to vector<2x8x8xf32>
    "tpu.trace_start"() <{level = 10 : i32, message = "bqd,bkd->bqk"}> : () -> ()
    %cst_45 = arith.constant dense<0.000000e+00> : vector<2x8x8xf32>
    %100 = tpu.matmul %97, %98, %cst_45 {dimension_numbers = #tpu.dot_dimension_numbers<[2], [2], [1], [1], [0, 0, 0, 1, 1, 1], [0], [0]>} : vector<2x8x8xf32>, vector<2x8x8xf32>, vector<2x8x8xf32> -> vector<2x8x8xf32>
    %cst_46 = arith.constant -1.000000e+09 : f32
    "tpu.trace_stop"() : () -> ()
    %101 = vector.broadcast %cst_46 : f32 to vector<2x8x8xf32>
    %102 = arith.select %21, %101, %100 : vector<2x8x8xi1>, vector<2x8x8xf32>
    %cst_47 = arith.constant dense<0xFF800000> : vector<2x8xf32>
    %103 = vector.multi_reduction <maximumf>, %102, %cst_47 [2] : vector<2x8x8xf32> to vector<2x8xf32>
    %104 = vector.shape_cast %103 : vector<2x8xf32> to vector<2x8x1xf32>
    %105 = vector.broadcast %104 : vector<2x8x1xf32> to vector<2x8x8xf32>
    %106 = arith.subf %102, %105 : vector<2x8x8xf32>
    %107 = math.exp %106 : vector<2x8x8xf32>
    %cst_48 = arith.constant dense<0.000000e+00> : vector<2x8xf32>
    %108 = vector.multi_reduction <add>, %107, %cst_48 [2] : vector<2x8x8xf32> to vector<2x8xf32>
    %109 = vector.shape_cast %108 : vector<2x8xf32> to vector<2x8x1xf32>
    %110 = vector.broadcast %109 : vector<2x8x1xf32> to vector<2x8x8xf32>
    %111 = arith.divf %107, %110 : vector<2x8x8xf32>
    "tpu.trace_start"() <{level = 10 : i32, message = "bqk,bkd->bqd"}> : () -> ()
    %cst_49 = arith.constant dense<0.000000e+00> : vector<2x8x8xf32>
    %112 = tpu.matmul %111, %99, %cst_49 {dimension_numbers = #tpu.dot_dimension_numbers<[2], [1], [1], [2], [0, 0, 0, 1, 1, 2], [0], [0]>} : vector<2x8x8xf32>, vector<2x8x8xf32>, vector<2x8x8xf32> -> vector<2x8x8xf32>
    "tpu.trace_stop"() : () -> ()
    %113 = vector.extract_strided_slice %63 {offsets = [0, 0, 24], sizes = [2, 8, 8], strides = [1, 1, 1]} : vector<2x8x32xf32> to vector<2x8x8xf32>
    %114 = vector.extract_strided_slice %64 {offsets = [0, 0, 24], sizes = [2, 8, 8], strides = [1, 1, 1]} : vector<2x8x64xf32> to vector<2x8x8xf32>
    %115 = vector.extract_strided_slice %64 {offsets = [0, 0, 56], sizes = [2, 8, 8], strides = [1, 1, 1]} : vector<2x8x64xf32> to vector<2x8x8xf32>
    "tpu.trace_start"() <{level = 10 : i32, message = "bqd,bkd->bqk"}> : () -> ()
    %cst_50 = arith.constant dense<0.000000e+00> : vector<2x8x8xf32>
    %116 = tpu.matmul %113, %114, %cst_50 {dimension_numbers = #tpu.dot_dimension_numbers<[2], [2], [1], [1], [0, 0, 0, 1, 1, 1], [0], [0]>} : vector<2x8x8xf32>, vector<2x8x8xf32>, vector<2x8x8xf32> -> vector<2x8x8xf32>
    %cst_51 = arith.constant -1.000000e+09 : f32
    "tpu.trace_stop"() : () -> ()
    %117 = vector.broadcast %cst_51 : f32 to vector<2x8x8xf32>
    %118 = arith.select %21, %117, %116 : vector<2x8x8xi1>, vector<2x8x8xf32>
    %cst_52 = arith.constant dense<0xFF800000> : vector<2x8xf32>
    %119 = vector.multi_reduction <maximumf>, %118, %cst_52 [2] : vector<2x8x8xf32> to vector<2x8xf32>
    %120 = vector.shape_cast %119 : vector<2x8xf32> to vector<2x8x1xf32>
    %121 = vector.broadcast %120 : vector<2x8x1xf32> to vector<2x8x8xf32>
    %122 = arith.subf %118, %121 : vector<2x8x8xf32>
    %123 = math.exp %122 : vector<2x8x8xf32>
    %cst_53 = arith.constant dense<0.000000e+00> : vector<2x8xf32>
    %124 = vector.multi_reduction <add>, %123, %cst_53 [2] : vector<2x8x8xf32> to vector<2x8xf32>
    %125 = vector.shape_cast %124 : vector<2x8xf32> to vector<2x8x1xf32>
    %126 = vector.broadcast %125 : vector<2x8x1xf32> to vector<2x8x8xf32>
    %127 = arith.divf %123, %126 : vector<2x8x8xf32>
    "tpu.trace_start"() <{level = 10 : i32, message = "bqk,bkd->bqd"}> : () -> ()
    %cst_54 = arith.constant dense<0.000000e+00> : vector<2x8x8xf32>
    %128 = tpu.matmul %127, %115, %cst_54 {dimension_numbers = #tpu.dot_dimension_numbers<[2], [1], [1], [2], [0, 0, 0, 1, 1, 2], [0], [0]>} : vector<2x8x8xf32>, vector<2x8x8xf32>, vector<2x8x8xf32> -> vector<2x8x8xf32>
    "tpu.trace_stop"() : () -> ()
    %129 = tpu.concatenate %80, %96, %112, %128 in 2 : vector<2x8x8xf32>, vector<2x8x8xf32>, vector<2x8x8xf32>, vector<2x8x8xf32> -> vector<2x8x32xf32>
    %130 = vector.shape_cast %129 : vector<2x8x32xf32> to vector<16x32xf32>
    %c0_55 = arith.constant 0 : index
    %c0_56 = arith.constant 0 : index
    %c0_57 = arith.constant 0 : index
    %131 = vector.load %arg11[%c0_55, %c0_56, %c0_57] : memref<2x32x32xf32, #tpu.memory_space<vmem>>, vector<1x32x32xf32>
    %132 = vector.shape_cast %131 : vector<1x32x32xf32> to vector<32x32xf32>
    %cst_58 = arith.constant dense<0.000000e+00> : vector<16x32xf32>
    %133 = tpu.matmul %130, %132, %cst_58 {dimension_numbers = #tpu.dot_dimension_numbers<[1], [0], [0], [1], [0, 0, 1, 1], [], []>} : vector<16x32xf32>, vector<32x32xf32>, vector<16x32xf32> -> vector<16x32xf32>
    %c0_59 = arith.constant 0 : index
    %c0_60 = arith.constant 0 : index
    %c0_61 = arith.constant 0 : index
    %134 = vector.load %arg12[%c0_59, %c0_60, %c0_61] : memref<2x1x32xf32, #tpu.memory_space<vmem>>, vector<1x1x32xf32>
    %135 = vector.shape_cast %134 : vector<1x1x32xf32> to vector<1x32xf32>
    %136 = vector.broadcast %135 : vector<1x32xf32> to vector<16x32xf32>
    %137 = arith.addf %133, %136 : vector<16x32xf32>
    %c0_62 = arith.constant 0 : index
    %c0_63 = arith.constant 0 : index
    %c0_64 = arith.constant 0 : index
    %138 = vector.load %arg13[%c0_62, %c0_63, %c0_64] : memref<2x1x32xf32, #tpu.memory_space<vmem>>, vector<1x1x32xf32>
    %139 = vector.shape_cast %138 : vector<1x1x32xf32> to vector<1x32xf32>
    %c0_65 = arith.constant 0 : index
    %c0_66 = arith.constant 0 : index
    %c0_67 = arith.constant 0 : index
    %140 = vector.load %arg14[%c0_65, %c0_66, %c0_67] : memref<2x1x32xf32, #tpu.memory_space<vmem>>, vector<1x1x32xf32>
    %141 = vector.shape_cast %140 : vector<1x1x32xf32> to vector<1x32xf32>
    %cst_68 = arith.constant dense<0.000000e+00> : vector<16xf32>
    %142 = vector.multi_reduction <add>, %137, %cst_68 [1] : vector<16x32xf32> to vector<16xf32>
    %143 = vector.shape_cast %142 : vector<16xf32> to vector<16x1xf32>
    %cst_69 = arith.constant 3.200000e+01 : f32
    %144 = vector.broadcast %cst_69 : f32 to vector<16x1xf32>
    %145 = arith.divf %143, %144 : vector<16x1xf32>
    %146 = vector.broadcast %145 : vector<16x1xf32> to vector<16x32xf32>
    %147 = arith.subf %137, %146 : vector<16x32xf32>
    %148 = arith.mulf %147, %147 : vector<16x32xf32>
    %cst_70 = arith.constant dense<0.000000e+00> : vector<16xf32>
    %149 = vector.multi_reduction <add>, %148, %cst_70 [1] : vector<16x32xf32> to vector<16xf32>
    %150 = vector.shape_cast %149 : vector<16xf32> to vector<16x1xf32>
    %cst_71 = arith.constant 3.200000e+01 : f32
    %151 = vector.broadcast %cst_71 : f32 to vector<16x1xf32>
    %152 = arith.divf %150, %151 : vector<16x1xf32>
    %153 = vector.broadcast %145 : vector<16x1xf32> to vector<16x32xf32>
    %154 = arith.subf %137, %153 : vector<16x32xf32>
    %cst_72 = arith.constant 9.99999996E-13 : f32
    %155 = vector.broadcast %cst_72 : f32 to vector<16x1xf32>
    %156 = arith.addf %152, %155 : vector<16x1xf32>
    %157 = math.rsqrt %156 : vector<16x1xf32>
    %158 = vector.broadcast %157 : vector<16x1xf32> to vector<16x32xf32>
    %159 = arith.mulf %154, %158 : vector<16x32xf32>
    %160 = vector.broadcast %139 : vector<1x32xf32> to vector<16x32xf32>
    %161 = arith.mulf %159, %160 : vector<16x32xf32>
    %162 = vector.broadcast %141 : vector<1x32xf32> to vector<16x32xf32>
    %163 = arith.addf %161, %162 : vector<16x32xf32>
    %c0_73 = arith.constant 0 : index
    %c0_74 = arith.constant 0 : index
    %c0_75 = arith.constant 0 : index
    %164 = vector.load %arg15[%c0_73, %c0_74, %c0_75] : memref<2x32x64xf32, #tpu.memory_space<vmem>>, vector<1x32x64xf32>
    %165 = vector.shape_cast %164 : vector<1x32x64xf32> to vector<32x64xf32>
    %cst_76 = arith.constant dense<0.000000e+00> : vector<16x64xf32>
    %166 = tpu.matmul %163, %165, %cst_76 {dimension_numbers = #tpu.dot_dimension_numbers<[1], [0], [0], [1], [0, 0, 1, 1], [], []>} : vector<16x32xf32>, vector<32x64xf32>, vector<16x64xf32> -> vector<16x64xf32>
    %c0_77 = arith.constant 0 : index
    %c0_78 = arith.constant 0 : index
    %c0_79 = arith.constant 0 : index
    %167 = vector.load %arg16[%c0_77, %c0_78, %c0_79] : memref<2x1x64xf32, #tpu.memory_space<vmem>>, vector<1x1x64xf32>
    %168 = vector.shape_cast %167 : vector<1x1x64xf32> to vector<1x64xf32>
    %169 = vector.broadcast %168 : vector<1x64xf32> to vector<16x64xf32>
    %170 = arith.addf %166, %169 : vector<16x64xf32>
    %cst_80 = arith.constant 0.000000e+00 : f32
    %171 = vector.broadcast %cst_80 : f32 to vector<16x64xf32>
    %172 = arith.maximumf %170, %171 : vector<16x64xf32>
    %c0_81 = arith.constant 0 : index
    %c0_82 = arith.constant 0 : index
    %c0_83 = arith.constant 0 : index
    %173 = vector.load %arg17[%c0_81, %c0_82, %c0_83] : memref<2x64x32xf32, #tpu.memory_space<vmem>>, vector<1x64x32xf32>
    %174 = vector.shape_cast %173 : vector<1x64x32xf32> to vector<64x32xf32>
    %cst_84 = arith.constant dense<0.000000e+00> : vector<16x32xf32>
    %175 = tpu.matmul %172, %174, %cst_84 {dimension_numbers = #tpu.dot_dimension_numbers<[1], [0], [0], [1], [0, 0, 1, 1], [], []>} : vector<16x64xf32>, vector<64x32xf32>, vector<16x32xf32> -> vector<16x32xf32>
    %c0_85 = arith.constant 0 : index
    %c0_86 = arith.constant 0 : index
    %c0_87 = arith.constant 0 : index
    %176 = vector.load %arg18[%c0_85, %c0_86, %c0_87] : memref<2x1x32xf32, #tpu.memory_space<vmem>>, vector<1x1x32xf32>
    %177 = vector.shape_cast %176 : vector<1x1x32xf32> to vector<1x32xf32>
    %178 = vector.broadcast %177 : vector<1x32xf32> to vector<16x32xf32>
    %179 = arith.addf %175, %178 : vector<16x32xf32>
    %c0_88 = arith.constant 0 : index
    %c0_89 = arith.constant 0 : index
    %c0_90 = arith.constant 0 : index
    %180 = vector.load %arg19[%c0_88, %c0_89, %c0_90] : memref<2x1x32xf32, #tpu.memory_space<vmem>>, vector<1x1x32xf32>
    %181 = vector.shape_cast %180 : vector<1x1x32xf32> to vector<1x32xf32>
    %c0_91 = arith.constant 0 : index
    %c0_92 = arith.constant 0 : index
    %c0_93 = arith.constant 0 : index
    %182 = vector.load %arg20[%c0_91, %c0_92, %c0_93] : memref<2x1x32xf32, #tpu.memory_space<vmem>>, vector<1x1x32xf32>
    %183 = vector.shape_cast %182 : vector<1x1x32xf32> to vector<1x32xf32>
    %cst_94 = arith.constant dense<0.000000e+00> : vector<16xf32>
    %184 = vector.multi_reduction <add>, %179, %cst_94 [1] : vector<16x32xf32> to vector<16xf32>
    %185 = vector.shape_cast %184 : vector<16xf32> to vector<16x1xf32>
    %cst_95 = arith.constant 3.200000e+01 : f32
    %186 = vector.broadcast %cst_95 : f32 to vector<16x1xf32>
    %187 = arith.divf %185, %186 : vector<16x1xf32>
    %188 = vector.broadcast %187 : vector<16x1xf32> to vector<16x32xf32>
    %189 = arith.subf %179, %188 : vector<16x32xf32>
    %190 = arith.mulf %189, %189 : vector<16x32xf32>
    %cst_96 = arith.constant dense<0.000000e+00> : vector<16xf32>
    %191 = vector.multi_reduction <add>, %190, %cst_96 [1] : vector<16x32xf32> to vector<16xf32>
    %192 = vector.shape_cast %191 : vector<16xf32> to vector<16x1xf32>
    %cst_97 = arith.constant 3.200000e+01 : f32
    %193 = vector.broadcast %cst_97 : f32 to vector<16x1xf32>
    %194 = arith.divf %192, %193 : vector<16x1xf32>
    %195 = vector.broadcast %187 : vector<16x1xf32> to vector<16x32xf32>
    %196 = arith.subf %179, %195 : vector<16x32xf32>
    %cst_98 = arith.constant 9.99999996E-13 : f32
    %197 = vector.broadcast %cst_98 : f32 to vector<16x1xf32>
    %198 = arith.addf %194, %197 : vector<16x1xf32>
    %199 = math.rsqrt %198 : vector<16x1xf32>
    %200 = vector.broadcast %199 : vector<16x1xf32> to vector<16x32xf32>
    %201 = arith.mulf %196, %200 : vector<16x32xf32>
    %202 = vector.broadcast %181 : vector<1x32xf32> to vector<16x32xf32>
    %203 = arith.mulf %201, %202 : vector<16x32xf32>
    %204 = vector.broadcast %183 : vector<1x32xf32> to vector<16x32xf32>
    %205 = arith.addf %203, %204 : vector<16x32xf32>
    %c1 = arith.constant 1 : index
    %c0_99 = arith.constant 0 : index
    %c0_100 = arith.constant 0 : index
    %206 = vector.load %arg5[%c1, %c0_99, %c0_100] : memref<2x1x32xf32, #tpu.memory_space<vmem>>, vector<1x1x32xf32>
    %207 = vector.shape_cast %206 : vector<1x1x32xf32> to vector<1x32xf32>
    %c1_101 = arith.constant 1 : index
    %c0_102 = arith.constant 0 : index
    %c0_103 = arith.constant 0 : index
    %208 = vector.load %arg6[%c1_101, %c0_102, %c0_103] : memref<2x1x32xf32, #tpu.memory_space<vmem>>, vector<1x1x32xf32>
    %209 = vector.shape_cast %208 : vector<1x1x32xf32> to vector<1x32xf32>
    %cst_104 = arith.constant dense<0.000000e+00> : vector<16xf32>
    %210 = vector.multi_reduction <add>, %205, %cst_104 [1] : vector<16x32xf32> to vector<16xf32>
    %211 = vector.shape_cast %210 : vector<16xf32> to vector<16x1xf32>
    %cst_105 = arith.constant 3.200000e+01 : f32
    %212 = vector.broadcast %cst_105 : f32 to vector<16x1xf32>
    %213 = arith.divf %211, %212 : vector<16x1xf32>
    %214 = vector.broadcast %213 : vector<16x1xf32> to vector<16x32xf32>
    %215 = arith.subf %205, %214 : vector<16x32xf32>
    %216 = arith.mulf %215, %215 : vector<16x32xf32>
    %cst_106 = arith.constant dense<0.000000e+00> : vector<16xf32>
    %217 = vector.multi_reduction <add>, %216, %cst_106 [1] : vector<16x32xf32> to vector<16xf32>
    %218 = vector.shape_cast %217 : vector<16xf32> to vector<16x1xf32>
    %cst_107 = arith.constant 3.200000e+01 : f32
    %219 = vector.broadcast %cst_107 : f32 to vector<16x1xf32>
    %220 = arith.divf %218, %219 : vector<16x1xf32>
    %221 = vector.broadcast %213 : vector<16x1xf32> to vector<16x32xf32>
    %222 = arith.subf %205, %221 : vector<16x32xf32>
    %cst_108 = arith.constant 9.99999996E-13 : f32
    %223 = vector.broadcast %cst_108 : f32 to vector<16x1xf32>
    %224 = arith.addf %220, %223 : vector<16x1xf32>
    %225 = math.rsqrt %224 : vector<16x1xf32>
    %226 = vector.broadcast %225 : vector<16x1xf32> to vector<16x32xf32>
    %227 = arith.mulf %222, %226 : vector<16x32xf32>
    %228 = vector.broadcast %207 : vector<1x32xf32> to vector<16x32xf32>
    %229 = arith.mulf %227, %228 : vector<16x32xf32>
    %230 = vector.broadcast %209 : vector<1x32xf32> to vector<16x32xf32>
    %231 = arith.addf %229, %230 : vector<16x32xf32>
    %c1_109 = arith.constant 1 : index
    %c0_110 = arith.constant 0 : index
    %c0_111 = arith.constant 0 : index
    %232 = vector.load %arg7[%c1_109, %c0_110, %c0_111] : memref<2x32x32xf32, #tpu.memory_space<vmem>>, vector<1x32x32xf32>
    %233 = vector.shape_cast %232 : vector<1x32x32xf32> to vector<32x32xf32>
    %cst_112 = arith.constant dense<0.000000e+00> : vector<16x32xf32>
    %234 = tpu.matmul %231, %233, %cst_112 {dimension_numbers = #tpu.dot_dimension_numbers<[1], [0], [0], [1], [0, 0, 1, 1], [], []>} : vector<16x32xf32>, vector<32x32xf32>, vector<16x32xf32> -> vector<16x32xf32>
    %c1_113 = arith.constant 1 : index
    %c0_114 = arith.constant 0 : index
    %c0_115 = arith.constant 0 : index
    %235 = vector.load %arg8[%c1_113, %c0_114, %c0_115] : memref<2x1x32xf32, #tpu.memory_space<vmem>>, vector<1x1x32xf32>
    %236 = vector.shape_cast %235 : vector<1x1x32xf32> to vector<1x32xf32>
    %237 = vector.broadcast %236 : vector<1x32xf32> to vector<16x32xf32>
    %238 = arith.addf %234, %237 : vector<16x32xf32>
    %c1_116 = arith.constant 1 : index
    %c0_117 = arith.constant 0 : index
    %c0_118 = arith.constant 0 : index
    %239 = vector.load %arg9[%c1_116, %c0_117, %c0_118] : memref<2x32x64xf32, #tpu.memory_space<vmem>>, vector<1x32x64xf32>
    %240 = vector.shape_cast %239 : vector<1x32x64xf32> to vector<32x64xf32>
    %cst_119 = arith.constant dense<0.000000e+00> : vector<16x64xf32>
    %241 = tpu.matmul %22, %240, %cst_119 {dimension_numbers = #tpu.dot_dimension_numbers<[1], [0], [0], [1], [0, 0, 1, 1], [], []>} : vector<16x32xf32>, vector<32x64xf32>, vector<16x64xf32> -> vector<16x64xf32>
    %c1_120 = arith.constant 1 : index
    %c0_121 = arith.constant 0 : index
    %c0_122 = arith.constant 0 : index
    %242 = vector.load %arg10[%c1_120, %c0_121, %c0_122] : memref<2x1x64xf32, #tpu.memory_space<vmem>>, vector<1x1x64xf32>
    %243 = vector.shape_cast %242 : vector<1x1x64xf32> to vector<1x64xf32>
    %244 = vector.broadcast %243 : vector<1x64xf32> to vector<16x64xf32>
    %245 = arith.addf %241, %244 : vector<16x64xf32>
    %246 = vector.shape_cast %238 : vector<16x32xf32> to vector<2x8x32xf32>
    %247 = vector.shape_cast %245 : vector<16x64xf32> to vector<2x8x64xf32>
    %248 = vector.extract_strided_slice %246 {offsets = [0, 0, 0], sizes = [2, 8, 8], strides = [1, 1, 1]} : vector<2x8x32xf32> to vector<2x8x8xf32>
    %249 = vector.extract_strided_slice %247 {offsets = [0, 0, 0], sizes = [2, 8, 8], strides = [1, 1, 1]} : vector<2x8x64xf32> to vector<2x8x8xf32>
    %250 = vector.extract_strided_slice %247 {offsets = [0, 0, 32], sizes = [2, 8, 8], strides = [1, 1, 1]} : vector<2x8x64xf32> to vector<2x8x8xf32>
    "tpu.trace_start"() <{level = 10 : i32, message = "bqd,bkd->bqk"}> : () -> ()
    %cst_123 = arith.constant dense<0.000000e+00> : vector<2x8x8xf32>
    %251 = tpu.matmul %248, %249, %cst_123 {dimension_numbers = #tpu.dot_dimension_numbers<[2], [2], [1], [1], [0, 0, 0, 1, 1, 1], [0], [0]>} : vector<2x8x8xf32>, vector<2x8x8xf32>, vector<2x8x8xf32> -> vector<2x8x8xf32>
    %cst_124 = arith.constant -1.000000e+09 : f32
    "tpu.trace_stop"() : () -> ()
    %252 = vector.broadcast %cst_124 : f32 to vector<2x8x8xf32>
    %253 = arith.select %21, %252, %251 : vector<2x8x8xi1>, vector<2x8x8xf32>
    %cst_125 = arith.constant dense<0xFF800000> : vector<2x8xf32>
    %254 = vector.multi_reduction <maximumf>, %253, %cst_125 [2] : vector<2x8x8xf32> to vector<2x8xf32>
    %255 = vector.shape_cast %254 : vector<2x8xf32> to vector<2x8x1xf32>
    %256 = vector.broadcast %255 : vector<2x8x1xf32> to vector<2x8x8xf32>
    %257 = arith.subf %253, %256 : vector<2x8x8xf32>
    %258 = math.exp %257 : vector<2x8x8xf32>
    %cst_126 = arith.constant dense<0.000000e+00> : vector<2x8xf32>
    %259 = vector.multi_reduction <add>, %258, %cst_126 [2] : vector<2x8x8xf32> to vector<2x8xf32>
    %260 = vector.shape_cast %259 : vector<2x8xf32> to vector<2x8x1xf32>
    %261 = vector.broadcast %260 : vector<2x8x1xf32> to vector<2x8x8xf32>
    %262 = arith.divf %258, %261 : vector<2x8x8xf32>
    "tpu.trace_start"() <{level = 10 : i32, message = "bqk,bkd->bqd"}> : () -> ()
    %cst_127 = arith.constant dense<0.000000e+00> : vector<2x8x8xf32>
    %263 = tpu.matmul %262, %250, %cst_127 {dimension_numbers = #tpu.dot_dimension_numbers<[2], [1], [1], [2], [0, 0, 0, 1, 1, 2], [0], [0]>} : vector<2x8x8xf32>, vector<2x8x8xf32>, vector<2x8x8xf32> -> vector<2x8x8xf32>
    "tpu.trace_stop"() : () -> ()
    %264 = vector.extract_strided_slice %246 {offsets = [0, 0, 8], sizes = [2, 8, 8], strides = [1, 1, 1]} : vector<2x8x32xf32> to vector<2x8x8xf32>
    %265 = vector.extract_strided_slice %247 {offsets = [0, 0, 8], sizes = [2, 8, 8], strides = [1, 1, 1]} : vector<2x8x64xf32> to vector<2x8x8xf32>
    %266 = vector.extract_strided_slice %247 {offsets = [0, 0, 40], sizes = [2, 8, 8], strides = [1, 1, 1]} : vector<2x8x64xf32> to vector<2x8x8xf32>
    "tpu.trace_start"() <{level = 10 : i32, message = "bqd,bkd->bqk"}> : () -> ()
    %cst_128 = arith.constant dense<0.000000e+00> : vector<2x8x8xf32>
    %267 = tpu.matmul %264, %265, %cst_128 {dimension_numbers = #tpu.dot_dimension_numbers<[2], [2], [1], [1], [0, 0, 0, 1, 1, 1], [0], [0]>} : vector<2x8x8xf32>, vector<2x8x8xf32>, vector<2x8x8xf32> -> vector<2x8x8xf32>
    %cst_129 = arith.constant -1.000000e+09 : f32
    "tpu.trace_stop"() : () -> ()
    %268 = vector.broadcast %cst_129 : f32 to vector<2x8x8xf32>
    %269 = arith.select %21, %268, %267 : vector<2x8x8xi1>, vector<2x8x8xf32>
    %cst_130 = arith.constant dense<0xFF800000> : vector<2x8xf32>
    %270 = vector.multi_reduction <maximumf>, %269, %cst_130 [2] : vector<2x8x8xf32> to vector<2x8xf32>
    %271 = vector.shape_cast %270 : vector<2x8xf32> to vector<2x8x1xf32>
    %272 = vector.broadcast %271 : vector<2x8x1xf32> to vector<2x8x8xf32>
    %273 = arith.subf %269, %272 : vector<2x8x8xf32>
    %274 = math.exp %273 : vector<2x8x8xf32>
    %cst_131 = arith.constant dense<0.000000e+00> : vector<2x8xf32>
    %275 = vector.multi_reduction <add>, %274, %cst_131 [2] : vector<2x8x8xf32> to vector<2x8xf32>
    %276 = vector.shape_cast %275 : vector<2x8xf32> to vector<2x8x1xf32>
    %277 = vector.broadcast %276 : vector<2x8x1xf32> to vector<2x8x8xf32>
    %278 = arith.divf %274, %277 : vector<2x8x8xf32>
    "tpu.trace_start"() <{level = 10 : i32, message = "bqk,bkd->bqd"}> : () -> ()
    %cst_132 = arith.constant dense<0.000000e+00> : vector<2x8x8xf32>
    %279 = tpu.matmul %278, %266, %cst_132 {dimension_numbers = #tpu.dot_dimension_numbers<[2], [1], [1], [2], [0, 0, 0, 1, 1, 2], [0], [0]>} : vector<2x8x8xf32>, vector<2x8x8xf32>, vector<2x8x8xf32> -> vector<2x8x8xf32>
    "tpu.trace_stop"() : () -> ()
    %280 = vector.extract_strided_slice %246 {offsets = [0, 0, 16], sizes = [2, 8, 8], strides = [1, 1, 1]} : vector<2x8x32xf32> to vector<2x8x8xf32>
    %281 = vector.extract_strided_slice %247 {offsets = [0, 0, 16], sizes = [2, 8, 8], strides = [1, 1, 1]} : vector<2x8x64xf32> to vector<2x8x8xf32>
    %282 = vector.extract_strided_slice %247 {offsets = [0, 0, 48], sizes = [2, 8, 8], strides = [1, 1, 1]} : vector<2x8x64xf32> to vector<2x8x8xf32>
    "tpu.trace_start"() <{level = 10 : i32, message = "bqd,bkd->bqk"}> : () -> ()
    %cst_133 = arith.constant dense<0.000000e+00> : vector<2x8x8xf32>
    %283 = tpu.matmul %280, %281, %cst_133 {dimension_numbers = #tpu.dot_dimension_numbers<[2], [2], [1], [1], [0, 0, 0, 1, 1, 1], [0], [0]>} : vector<2x8x8xf32>, vector<2x8x8xf32>, vector<2x8x8xf32> -> vector<2x8x8xf32>
    %cst_134 = arith.constant -1.000000e+09 : f32
    "tpu.trace_stop"() : () -> ()
    %284 = vector.broadcast %cst_134 : f32 to vector<2x8x8xf32>
    %285 = arith.select %21, %284, %283 : vector<2x8x8xi1>, vector<2x8x8xf32>
    %cst_135 = arith.constant dense<0xFF800000> : vector<2x8xf32>
    %286 = vector.multi_reduction <maximumf>, %285, %cst_135 [2] : vector<2x8x8xf32> to vector<2x8xf32>
    %287 = vector.shape_cast %286 : vector<2x8xf32> to vector<2x8x1xf32>
    %288 = vector.broadcast %287 : vector<2x8x1xf32> to vector<2x8x8xf32>
    %289 = arith.subf %285, %288 : vector<2x8x8xf32>
    %290 = math.exp %289 : vector<2x8x8xf32>
    %cst_136 = arith.constant dense<0.000000e+00> : vector<2x8xf32>
    %291 = vector.multi_reduction <add>, %290, %cst_136 [2] : vector<2x8x8xf32> to vector<2x8xf32>
    %292 = vector.shape_cast %291 : vector<2x8xf32> to vector<2x8x1xf32>
    %293 = vector.broadcast %292 : vector<2x8x1xf32> to vector<2x8x8xf32>
    %294 = arith.divf %290, %293 : vector<2x8x8xf32>
    "tpu.trace_start"() <{level = 10 : i32, message = "bqk,bkd->bqd"}> : () -> ()
    %cst_137 = arith.constant dense<0.000000e+00> : vector<2x8x8xf32>
    %295 = tpu.matmul %294, %282, %cst_137 {dimension_numbers = #tpu.dot_dimension_numbers<[2], [1], [1], [2], [0, 0, 0, 1, 1, 2], [0], [0]>} : vector<2x8x8xf32>, vector<2x8x8xf32>, vector<2x8x8xf32> -> vector<2x8x8xf32>
    "tpu.trace_stop"() : () -> ()
    %296 = vector.extract_strided_slice %246 {offsets = [0, 0, 24], sizes = [2, 8, 8], strides = [1, 1, 1]} : vector<2x8x32xf32> to vector<2x8x8xf32>
    %297 = vector.extract_strided_slice %247 {offsets = [0, 0, 24], sizes = [2, 8, 8], strides = [1, 1, 1]} : vector<2x8x64xf32> to vector<2x8x8xf32>
    %298 = vector.extract_strided_slice %247 {offsets = [0, 0, 56], sizes = [2, 8, 8], strides = [1, 1, 1]} : vector<2x8x64xf32> to vector<2x8x8xf32>
    "tpu.trace_start"() <{level = 10 : i32, message = "bqd,bkd->bqk"}> : () -> ()
    %cst_138 = arith.constant dense<0.000000e+00> : vector<2x8x8xf32>
    %299 = tpu.matmul %296, %297, %cst_138 {dimension_numbers = #tpu.dot_dimension_numbers<[2], [2], [1], [1], [0, 0, 0, 1, 1, 1], [0], [0]>} : vector<2x8x8xf32>, vector<2x8x8xf32>, vector<2x8x8xf32> -> vector<2x8x8xf32>
    %cst_139 = arith.constant -1.000000e+09 : f32
    "tpu.trace_stop"() : () -> ()
    %300 = vector.broadcast %cst_139 : f32 to vector<2x8x8xf32>
    %301 = arith.select %21, %300, %299 : vector<2x8x8xi1>, vector<2x8x8xf32>
    %cst_140 = arith.constant dense<0xFF800000> : vector<2x8xf32>
    %302 = vector.multi_reduction <maximumf>, %301, %cst_140 [2] : vector<2x8x8xf32> to vector<2x8xf32>
    %303 = vector.shape_cast %302 : vector<2x8xf32> to vector<2x8x1xf32>
    %304 = vector.broadcast %303 : vector<2x8x1xf32> to vector<2x8x8xf32>
    %305 = arith.subf %301, %304 : vector<2x8x8xf32>
    %306 = math.exp %305 : vector<2x8x8xf32>
    %cst_141 = arith.constant dense<0.000000e+00> : vector<2x8xf32>
    %307 = vector.multi_reduction <add>, %306, %cst_141 [2] : vector<2x8x8xf32> to vector<2x8xf32>
    %308 = vector.shape_cast %307 : vector<2x8xf32> to vector<2x8x1xf32>
    %309 = vector.broadcast %308 : vector<2x8x1xf32> to vector<2x8x8xf32>
    %310 = arith.divf %306, %309 : vector<2x8x8xf32>
    "tpu.trace_start"() <{level = 10 : i32, message = "bqk,bkd->bqd"}> : () -> ()
    %cst_142 = arith.constant dense<0.000000e+00> : vector<2x8x8xf32>
    %311 = tpu.matmul %310, %298, %cst_142 {dimension_numbers = #tpu.dot_dimension_numbers<[2], [1], [1], [2], [0, 0, 0, 1, 1, 2], [0], [0]>} : vector<2x8x8xf32>, vector<2x8x8xf32>, vector<2x8x8xf32> -> vector<2x8x8xf32>
    "tpu.trace_stop"() : () -> ()
    %312 = tpu.concatenate %263, %279, %295, %311 in 2 : vector<2x8x8xf32>, vector<2x8x8xf32>, vector<2x8x8xf32>, vector<2x8x8xf32> -> vector<2x8x32xf32>
    %313 = vector.shape_cast %312 : vector<2x8x32xf32> to vector<16x32xf32>
    %c1_143 = arith.constant 1 : index
    %c0_144 = arith.constant 0 : index
    %c0_145 = arith.constant 0 : index
    %314 = vector.load %arg11[%c1_143, %c0_144, %c0_145] : memref<2x32x32xf32, #tpu.memory_space<vmem>>, vector<1x32x32xf32>
    %315 = vector.shape_cast %314 : vector<1x32x32xf32> to vector<32x32xf32>
    %cst_146 = arith.constant dense<0.000000e+00> : vector<16x32xf32>
    %316 = tpu.matmul %313, %315, %cst_146 {dimension_numbers = #tpu.dot_dimension_numbers<[1], [0], [0], [1], [0, 0, 1, 1], [], []>} : vector<16x32xf32>, vector<32x32xf32>, vector<16x32xf32> -> vector<16x32xf32>
    %c1_147 = arith.constant 1 : index
    %c0_148 = arith.constant 0 : index
    %c0_149 = arith.constant 0 : index
    %317 = vector.load %arg12[%c1_147, %c0_148, %c0_149] : memref<2x1x32xf32, #tpu.memory_space<vmem>>, vector<1x1x32xf32>
    %318 = vector.shape_cast %317 : vector<1x1x32xf32> to vector<1x32xf32>
    %319 = vector.broadcast %318 : vector<1x32xf32> to vector<16x32xf32>
    %320 = arith.addf %316, %319 : vector<16x32xf32>
    %c1_150 = arith.constant 1 : index
    %c0_151 = arith.constant 0 : index
    %c0_152 = arith.constant 0 : index
    %321 = vector.load %arg13[%c1_150, %c0_151, %c0_152] : memref<2x1x32xf32, #tpu.memory_space<vmem>>, vector<1x1x32xf32>
    %322 = vector.shape_cast %321 : vector<1x1x32xf32> to vector<1x32xf32>
    %c1_153 = arith.constant 1 : index
    %c0_154 = arith.constant 0 : index
    %c0_155 = arith.constant 0 : index
    %323 = vector.load %arg14[%c1_153, %c0_154, %c0_155] : memref<2x1x32xf32, #tpu.memory_space<vmem>>, vector<1x1x32xf32>
    %324 = vector.shape_cast %323 : vector<1x1x32xf32> to vector<1x32xf32>
    %cst_156 = arith.constant dense<0.000000e+00> : vector<16xf32>
    %325 = vector.multi_reduction <add>, %320, %cst_156 [1] : vector<16x32xf32> to vector<16xf32>
    %326 = vector.shape_cast %325 : vector<16xf32> to vector<16x1xf32>
    %cst_157 = arith.constant 3.200000e+01 : f32
    %327 = vector.broadcast %cst_157 : f32 to vector<16x1xf32>
    %328 = arith.divf %326, %327 : vector<16x1xf32>
    %329 = vector.broadcast %328 : vector<16x1xf32> to vector<16x32xf32>
    %330 = arith.subf %320, %329 : vector<16x32xf32>
    %331 = arith.mulf %330, %330 : vector<16x32xf32>
    %cst_158 = arith.constant dense<0.000000e+00> : vector<16xf32>
    %332 = vector.multi_reduction <add>, %331, %cst_158 [1] : vector<16x32xf32> to vector<16xf32>
    %333 = vector.shape_cast %332 : vector<16xf32> to vector<16x1xf32>
    %cst_159 = arith.constant 3.200000e+01 : f32
    %334 = vector.broadcast %cst_159 : f32 to vector<16x1xf32>
    %335 = arith.divf %333, %334 : vector<16x1xf32>
    %336 = vector.broadcast %328 : vector<16x1xf32> to vector<16x32xf32>
    %337 = arith.subf %320, %336 : vector<16x32xf32>
    %cst_160 = arith.constant 9.99999996E-13 : f32
    %338 = vector.broadcast %cst_160 : f32 to vector<16x1xf32>
    %339 = arith.addf %335, %338 : vector<16x1xf32>
    %340 = math.rsqrt %339 : vector<16x1xf32>
    %341 = vector.broadcast %340 : vector<16x1xf32> to vector<16x32xf32>
    %342 = arith.mulf %337, %341 : vector<16x32xf32>
    %343 = vector.broadcast %322 : vector<1x32xf32> to vector<16x32xf32>
    %344 = arith.mulf %342, %343 : vector<16x32xf32>
    %345 = vector.broadcast %324 : vector<1x32xf32> to vector<16x32xf32>
    %346 = arith.addf %344, %345 : vector<16x32xf32>
    %c1_161 = arith.constant 1 : index
    %c0_162 = arith.constant 0 : index
    %c0_163 = arith.constant 0 : index
    %347 = vector.load %arg15[%c1_161, %c0_162, %c0_163] : memref<2x32x64xf32, #tpu.memory_space<vmem>>, vector<1x32x64xf32>
    %348 = vector.shape_cast %347 : vector<1x32x64xf32> to vector<32x64xf32>
    %cst_164 = arith.constant dense<0.000000e+00> : vector<16x64xf32>
    %349 = tpu.matmul %346, %348, %cst_164 {dimension_numbers = #tpu.dot_dimension_numbers<[1], [0], [0], [1], [0, 0, 1, 1], [], []>} : vector<16x32xf32>, vector<32x64xf32>, vector<16x64xf32> -> vector<16x64xf32>
    %c1_165 = arith.constant 1 : index
    %c0_166 = arith.constant 0 : index
    %c0_167 = arith.constant 0 : index
    %350 = vector.load %arg16[%c1_165, %c0_166, %c0_167] : memref<2x1x64xf32, #tpu.memory_space<vmem>>, vector<1x1x64xf32>
    %351 = vector.shape_cast %350 : vector<1x1x64xf32> to vector<1x64xf32>
    %352 = vector.broadcast %351 : vector<1x64xf32> to vector<16x64xf32>
    %353 = arith.addf %349, %352 : vector<16x64xf32>
    %cst_168 = arith.constant 0.000000e+00 : f32
    %354 = vector.broadcast %cst_168 : f32 to vector<16x64xf32>
    %355 = arith.maximumf %353, %354 : vector<16x64xf32>
    %c1_169 = arith.constant 1 : index
    %c0_170 = arith.constant 0 : index
    %c0_171 = arith.constant 0 : index
    %356 = vector.load %arg17[%c1_169, %c0_170, %c0_171] : memref<2x64x32xf32, #tpu.memory_space<vmem>>, vector<1x64x32xf32>
    %357 = vector.shape_cast %356 : vector<1x64x32xf32> to vector<64x32xf32>
    %cst_172 = arith.constant dense<0.000000e+00> : vector<16x32xf32>
    %358 = tpu.matmul %355, %357, %cst_172 {dimension_numbers = #tpu.dot_dimension_numbers<[1], [0], [0], [1], [0, 0, 1, 1], [], []>} : vector<16x64xf32>, vector<64x32xf32>, vector<16x32xf32> -> vector<16x32xf32>
    %c1_173 = arith.constant 1 : index
    %c0_174 = arith.constant 0 : index
    %c0_175 = arith.constant 0 : index
    %359 = vector.load %arg18[%c1_173, %c0_174, %c0_175] : memref<2x1x32xf32, #tpu.memory_space<vmem>>, vector<1x1x32xf32>
    %360 = vector.shape_cast %359 : vector<1x1x32xf32> to vector<1x32xf32>
    %361 = vector.broadcast %360 : vector<1x32xf32> to vector<16x32xf32>
    %362 = arith.addf %358, %361 : vector<16x32xf32>
    %c1_176 = arith.constant 1 : index
    %c0_177 = arith.constant 0 : index
    %c0_178 = arith.constant 0 : index
    %363 = vector.load %arg19[%c1_176, %c0_177, %c0_178] : memref<2x1x32xf32, #tpu.memory_space<vmem>>, vector<1x1x32xf32>
    %364 = vector.shape_cast %363 : vector<1x1x32xf32> to vector<1x32xf32>
    %c1_179 = arith.constant 1 : index
    %c0_180 = arith.constant 0 : index
    %c0_181 = arith.constant 0 : index
    %365 = vector.load %arg20[%c1_179, %c0_180, %c0_181] : memref<2x1x32xf32, #tpu.memory_space<vmem>>, vector<1x1x32xf32>
    %366 = vector.shape_cast %365 : vector<1x1x32xf32> to vector<1x32xf32>
    %cst_182 = arith.constant dense<0.000000e+00> : vector<16xf32>
    %367 = vector.multi_reduction <add>, %362, %cst_182 [1] : vector<16x32xf32> to vector<16xf32>
    %368 = vector.shape_cast %367 : vector<16xf32> to vector<16x1xf32>
    %cst_183 = arith.constant 3.200000e+01 : f32
    %369 = vector.broadcast %cst_183 : f32 to vector<16x1xf32>
    %370 = arith.divf %368, %369 : vector<16x1xf32>
    %371 = vector.broadcast %370 : vector<16x1xf32> to vector<16x32xf32>
    %372 = arith.subf %362, %371 : vector<16x32xf32>
    %373 = arith.mulf %372, %372 : vector<16x32xf32>
    %cst_184 = arith.constant dense<0.000000e+00> : vector<16xf32>
    %374 = vector.multi_reduction <add>, %373, %cst_184 [1] : vector<16x32xf32> to vector<16xf32>
    %375 = vector.shape_cast %374 : vector<16xf32> to vector<16x1xf32>
    %cst_185 = arith.constant 3.200000e+01 : f32
    %376 = vector.broadcast %cst_185 : f32 to vector<16x1xf32>
    %377 = arith.divf %375, %376 : vector<16x1xf32>
    %378 = vector.broadcast %370 : vector<16x1xf32> to vector<16x32xf32>
    %379 = arith.subf %362, %378 : vector<16x32xf32>
    %cst_186 = arith.constant 9.99999996E-13 : f32
    %380 = vector.broadcast %cst_186 : f32 to vector<16x1xf32>
    %381 = arith.addf %377, %380 : vector<16x1xf32>
    %382 = math.rsqrt %381 : vector<16x1xf32>
    %383 = vector.broadcast %382 : vector<16x1xf32> to vector<16x32xf32>
    %384 = arith.mulf %379, %383 : vector<16x32xf32>
    %385 = vector.broadcast %364 : vector<1x32xf32> to vector<16x32xf32>
    %386 = arith.mulf %384, %385 : vector<16x32xf32>
    %387 = vector.broadcast %366 : vector<1x32xf32> to vector<16x32xf32>
    %388 = arith.addf %386, %387 : vector<16x32xf32>
    %c0_187 = arith.constant 0 : index
    %c0_188 = arith.constant 0 : index
    %389 = vector.load %arg21[%c0_187, %c0_188] : memref<32x50xf32, #tpu.memory_space<vmem>>, vector<32x50xf32>
    %cst_189 = arith.constant dense<0.000000e+00> : vector<16x50xf32>
    %390 = tpu.matmul %388, %389, %cst_189 {dimension_numbers = #tpu.dot_dimension_numbers<[1], [0], [0], [1], [0, 0, 1, 1], [], []>} : vector<16x32xf32>, vector<32x50xf32>, vector<16x50xf32> -> vector<16x50xf32>
    %c0_190 = arith.constant 0 : index
    %c0_191 = arith.constant 0 : index
    %391 = vector.load %arg22[%c0_190, %c0_191] : memref<1x50xf32, #tpu.memory_space<vmem>>, vector<1x50xf32>
    %392 = vector.broadcast %391 : vector<1x50xf32> to vector<16x50xf32>
    %393 = arith.addf %390, %392 : vector<16x50xf32>
    %394 = vector.shape_cast %393 : vector<16x50xf32> to vector<2x8x50xf32>
    %cst_192 = arith.constant dense<0xFF800000> : vector<2x50xf32>
    %395 = vector.multi_reduction <maximumf>, %394, %cst_192 [1] : vector<2x8x50xf32> to vector<2x50xf32>
    %396 = vector.shape_cast %395 : vector<2x50xf32> to vector<2x1x50xf32>
    %397 = vector.broadcast %396 : vector<2x1x50xf32> to vector<2x8x50xf32>
    %398 = arith.subf %394, %397 : vector<2x8x50xf32>
    %399 = math.exp %398 : vector<2x8x50xf32>
    %cst_193 = arith.constant dense<0.000000e+00> : vector<2x50xf32>
    %400 = vector.multi_reduction <add>, %399, %cst_193 [1] : vector<2x8x50xf32> to vector<2x50xf32>
    %401 = vector.shape_cast %400 : vector<2x50xf32> to vector<2x1x50xf32>
    %402 = math.log %401 : vector<2x1x50xf32>
    %403 = arith.addf %402, %396 : vector<2x1x50xf32>
    %404 = vector.broadcast %403 : vector<2x1x50xf32> to vector<2x8x50xf32>
    %405 = arith.subf %394, %404 : vector<2x8x50xf32>
    %c0_194 = arith.constant 0 : index
    %c0_195 = arith.constant 0 : index
    %c0_196 = arith.constant 0 : index
    %406 = vector.load %arg23[%c0_194, %c0_195, %c0_196] : memref<2x8x50xf32, #tpu.memory_space<vmem>>, vector<2x8x50xf32>
    tpu.vector_store %arg23[%c0_194, %c0_195, %c0_196], %405 {strides = array<i32>} : memref<2x8x50xf32, #tpu.memory_space<vmem>>, vector<2x8x50xf32>,
    return
  }
}

</mosaic_0001>

<bundles_post_ra>
// kernel: tpu_custom_call.1
= control target key start
LH: loop header
LB: loop body
LE: loop exit
PB: predicated region body
PF: predicated region fallthrough
CT: control target
= control target key end

     0   :  { %s6220_s0 = inlined_call_operand.vmem [shape: s32[16,1], index: 0, kind: input, shape index: {}]   ;;  %s6221_s1 = inlined_call_operand.hbm [shape: s32[2,1,8], index: 1, kind: input, shape index: {}]   ;;  %s6222_s2 = inlined_call_operand.hbm [shape: f32[16,32], index: 2, kind: input, shape index: {}]   ;;  %s6223_s3 = inlined_call_operand.vmem [shape: f32[50,32], index: 3, kind: input, shape index: {}]   ;;  %s6224_s4 = inlined_call_operand.hbm [shape: f32[16,32], index: 4, kind: input, shape index: {}]   ;;  %s6225_s5 = inlined_call_operand.hbm [shape: f32[2,1,32], index: 5, kind: input, shape index: {}]   ;;  %s6226_s6 = inlined_call_operand.hbm [shape: f32[2,1,32], index: 6, kind: input, shape index: {}]   ;;  %s6227_s7 = inlined_call_operand.vmem [shape: f32[2,32,32], index: 7, kind: input, shape index: {}]   ;;  %s6228_s8 = inlined_call_operand.hbm [shape: f32[2,1,32], index: 8, kind: input, shape index: {}]   ;;  %s6229_s9 = inlined_call_operand.vmem [shape: f32[2,32,64], index: 9, kind: input, shape index: {}]   ;;  %s6230_s10 = inlined_call_operand.hbm [shape: f32[2,1,64], index: 10, kind: input, shape index: {}]   ;;  %s6231_s11 = inlined_call_operand.vmem [shape: f32[2,32,32], index: 11, kind: input, shape index: {}]   ;;  %s6232_s12 = inlined_call_operand.hbm [shape: f32[2,1,32], index: 12, kind: input, shape index: {}]   ;;  %s6233_s13 = inlined_call_operand.hbm [shape: f32[2,1,32], index: 13, kind: input, shape index: {}]   ;;  %s6234_s14 = inlined_call_operand.vmem [shape: f32[2,1,32], index: 14, kind: input, shape index: {}]   ;;  %s6235_s15 = inlined_call_operand.vmem [shape: f32[2,32,64], index: 15, kind: input, shape index: {}]   ;;  %s6236_s16 = inlined_call_operand.vmem [shape: f32[2,1,64], index: 16, kind: input, shape index: {}]   ;;  %s6237_s17 = inlined_call_operand.vmem [shape: f32[2,64,32], index: 17, kind: input, shape index: {}]   ;;  %s6238_s18 = inlined_call_operand.vmem [shape: f32[2,1,32], index: 18, kind: input, shape index: {}]   ;;  %s6239_s19 = inlined_call_operand.vmem [shape: f32[2,1,32], index: 19, kind: input, shape index: {}]   ;;  %s6240_s20 = inlined_call_operand.vmem [shape: f32[2,1,32], index: 20, kind: input, shape index: {}]   ;;  %s6241_s21 = inlined_call_operand.hbm [shape: f32[32,50], index: 21, kind: input, shape index: {}]   ;;  %s6242_s22 = inlined_call_operand.vmem [shape: f32[1,50], index: 22, kind: input, shape index: {}]   ;;  %s6243_s23 = inlined_call_operand.hbm [shape: f32[2,8,50], index: 23, kind: output, shape index: {}]  }
   0x1   :  { %6247 = sst [smem:[#allocation27_spill]] %s6220_s0 }
   0x2   :  { %6248 = sst [smem:[#allocation28_spill]] %s6221_s1 }
   0x3   :  { %6249 = sst [smem:[#allocation29_spill]] %s6222_s2 }
   0x4   :  { %6250 = sst [smem:[#allocation30_spill]] %s6223_s3 }
   0x5   :  { %6251 = sst [smem:[#allocation31_spill]] %s6224_s4 }
   0x6   :  { %6252 = sst [smem:[#allocation32_spill]] %s6225_s5 }
   0x7   :  { %6253 = sst [smem:[#allocation33_spill]] %s6226_s6 }
   0x8   :  { %6254 = sst [smem:[#allocation34_spill]] %s6227_s7 }
   0x9   :  { %28 = vsyncpa [#allocation3], 0 }
   0xa   :  { %29 = vsyncpa [#allocation6], 0 }
   0xb   :  { %30 = vsyncpa [#allocation9], 0 }
   0xc   :  { %31 = vsyncpa [#allocation12], 0 }
   0xd   :  { %32 = vsyncpa [#allocation15], 0 }
   0xe   :  { %33 = vsyncpa [#allocation18], 0 }
   0xf   :  { %34 = vsyncpa [#allocation4], 0  ;;  %s5370_s4 = smov [#allocation5]  }
  0x10   :  { %s54_s30 = sshll.u32 %s5370_s4, 4  ;;  %s55_s30 = int_to_ptr.vmem [resolvable:$true] %s54_s30 }
  0x11   :  { %s5144_s24 = scalar_lea.vmem %s55_s30, 256  ;;  %p5149_p1 = scmp.lt.s32.totalorder %s55_s30, %s55_s30 }
  0x12   :  { %p5145_p0 = scmp.ne.s32.totalorder %s55_s30, %s5144_s24  ;;  %p5150_p2 = scmp.lt.s32.totalorder %s5144_s24, %s5144_s24 }
  0x14   :  { %p5151_p3 = por %p5150_p2, %p5149_p1 }
  0x16   :  { %p5152_p4 = pnand %p5151_p3, %p5145_p0 }
  0x18   :  { %5155 = shalt.err (!%p5152_p4)
}
  0x19   :  { %s5371_s25 = smov 128   ;;  %s5372_s5 = smov 8  }
  0x1a   :  { %s6255_s2 = sld [smem:[#allocation29_spill]]  ;;  %s5373_s6 = smov [#allocation8]  }
  0x1b   :  { %s80_s27 = sshll.u32 %s5373_s6, 4  ;;  %s5374_s7 = smov [#allocation11]   ;;  %s81_s27 = int_to_ptr.vmem [resolvable:$true] %s80_s27 }
  0x1c   :  { %s106_s28 = sshll.u32 %s5374_s7, 4  ;;  %s5164_s29 = scalar_lea.vmem %s81_s27, 32  ;;  %s107_s28 = int_to_ptr.vmem [resolvable:$true] %s106_s28 }
  0x1d   :  { %p5165_p5 = scmp.ne.s32.totalorder %s81_s27, %s5164_s29  ;;  %p5169_p6 = scmp.lt.s32.totalorder %s81_s27, %s81_s27 }
  0x1e   :  { %p5170_p7 = scmp.lt.s32.totalorder %s5164_s29, %s5164_s29 }
  0x20   :  { %60 = dma.hbm_to_vmem [thread:$0]  %s6255_s2, 256, %s55_s30, [#allocation6], %s5371_s25, %s5371_s25, %s5372_s5  }
  0x21   :  { %p5171_p8 = por %p5170_p7, %p5169_p6 }
  0x23   :  { %p5172_p9 = pnand %p5171_p8, %p5165_p5 }
  0x25   :  { %5175 = shalt.err (!%p5172_p9)
}
  0x26   :  { %s5375_s3 = smov 16   ;;  %s5376_s0 = smov 1  }
  0x27   :  { %s6256_s30 = sld [smem:[#allocation32_spill]]  ;;  %s5184_s1 = scalar_lea.vmem %s107_s28, 32 }
  0x28   :  { %p5185_p10 = scmp.ne.s32.totalorder %s107_s28, %s5184_s1  ;;  %p5189_p11 = scmp.lt.s32.totalorder %s107_s28, %s107_s28 }
  0x29   :  { %p5190_p12 = scmp.lt.s32.totalorder %s5184_s1, %s5184_s1 }
  0x2b   :  { %p5191_p13 = por %p5190_p12, %p5189_p11 }
  0x2d   :  { %86 = dma.hbm_to_vmem [thread:$0]  %s6256_s30, 32, %s81_s27, [#allocation9], %s5375_s3, %s5375_s3, %s5376_s0  }
  0x2e   :  { %p5192_p0 = pnand %p5191_p13, %p5185_p10 }
  0x30   :  { %5195 = shalt.err (!%p5192_p0)
}
  0x31   :  { %112 = dma.hbm_to_vmem [thread:$0]  %s6228_s8, 32, %s107_s28, [#allocation12], %s5375_s3, %s5375_s3, %s5376_s0  }
  0x32   :  { %s5377_s6 = smov [#allocation14]   ;;  %s5378_s29 = smov [#allocation2]  }
  0x33   :  { %s134_s7 = sshll.u32 %s5377_s6, 4  ;;  %s42_s27 = sshll.u32 %s5378_s29, 4  ;;  %s135_s7 = int_to_ptr.vmem [resolvable:$true] %s134_s7  ;;  %s43_s27 = int_to_ptr.vmem [resolvable:$true] %s42_s27 }
  0x34   :  { %s5204_s4 = scalar_lea.vmem %s135_s7, 32  ;;  %p5209_p2 = scmp.lt.s32.totalorder %s135_s7, %s135_s7 }
  0x35   :  { %p5205_p1 = scmp.ne.s32.totalorder %s135_s7, %s5204_s4  ;;  %p5210_p3 = scmp.lt.s32.totalorder %s5204_s4, %s5204_s4 }
  0x37   :  { %p5211_p4 = por %p5210_p3, %p5209_p2 }
  0x39   :  { %p5212_p5 = pnand %p5211_p4, %p5205_p1 }
  0x3b   :  { %5215 = shalt.err (!%p5212_p5)
}
  0x3c   :  { %140 = dma.hbm_to_vmem [thread:$0]  %s6232_s12, 32, %s135_s7, [#allocation15], %s5375_s3, %s5375_s3, %s5376_s0  }
  0x3d   :  { %s5224_s8 = scalar_lea.vmem %s43_s27, 32  ;;  %p5229_p7 = scmp.lt.s32.totalorder %s43_s27, %s43_s27 }
  0x3e   :  { %p5225_p6 = scmp.ne.s32.totalorder %s43_s27, %s5224_s8  ;;  %p5230_p8 = scmp.lt.s32.totalorder %s5224_s8, %s5224_s8 }
  0x40   :  { %p5231_p9 = por %p5230_p8, %p5229_p7 }
  0x42   :  { %p5232_p10 = pnand %p5231_p9, %p5225_p6 }
  0x44   :  { %5235 = shalt.err (!%p5232_p10)
}
  0x45   :  { %s6257_s26 = sld [smem:[#allocation28_spill]]  ;;  %s5379_s2 = smov [#allocation7]  }
  0x46   :  { %s68_s6 = sshll.u32 %s5379_s2, 4  ;;  %s5380_s29 = smov [#allocation10]   ;;  %s69_s6 = int_to_ptr.vmem [resolvable:$true] %s68_s6 }
  0x47   :  { %s92_s12 = sshll.u32 %s5380_s29, 4  ;;  %s5244_s7 = scalar_lea.vmem %s69_s6, 256  ;;  %s93_s12 = int_to_ptr.vmem [resolvable:$true] %s92_s12 }
  0x48   :  { %p5245_p11 = scmp.ne.s32.totalorder %s69_s6, %s5244_s7  ;;  %p5249_p12 = scmp.lt.s32.totalorder %s69_s6, %s69_s6 }
  0x49   :  { %p5250_p13 = scmp.lt.s32.totalorder %s5244_s7, %s5244_s7 }
  0x4b   :  { %48 = dma.hbm_to_vmem [thread:$0]  %s6257_s26, 32, %s43_s27, [#allocation3], %s5375_s3, %s5375_s3, %s5376_s0  }
  0x4c   :  { %p5251_p0 = por %p5250_p13, %p5249_p12 }
  0x4e   :  { %p5252_p1 = pnand %p5251_p0, %p5245_p11 }
  0x50   :  { %5255 = shalt.err (!%p5252_p1)
}
  0x51   :  { %s6258_s30 = sld [smem:[#allocation31_spill]]  ;;  %s5264_s27 = scalar_lea.vmem %s93_s12, 32 }
  0x52   :  { %p5265_p2 = scmp.ne.s32.totalorder %s93_s12, %s5264_s27  ;;  %p5269_p3 = scmp.lt.s32.totalorder %s93_s12, %s93_s12 }
  0x53   :  { %p5270_p4 = scmp.lt.s32.totalorder %s5264_s27, %s5264_s27 }
  0x55   :  { %p5271_p5 = por %p5270_p4, %p5269_p3 }
  0x57   :  { %74 = dma.hbm_to_vmem [thread:$0]  %s6258_s30, 256, %s69_s6, [#allocation6], %s5371_s25, %s5371_s25, %s5372_s5  }
  0x58   :  { %p5272_p6 = pnand %p5271_p5, %p5265_p2 }
  0x5a   :  { %5275 = shalt.err (!%p5272_p6)
}
  0x5b   :  { %s6259_s1 = sld [smem:[#allocation33_spill]]  ;;  %s5381_s26 = smov [#allocation13]  }
  0x5c   :  { %s120_s2 = sshll.u32 %s5381_s26, 4  ;;  %s5382_s29 = smov [#allocation16]   ;;  %s121_s2 = int_to_ptr.vmem [resolvable:$true] %s120_s2 }
  0x5d   :  { %s146_s6 = sshll.u32 %s5382_s29, 4  ;;  %s5284_s7 = scalar_lea.vmem %s121_s2, 32  ;;  %s147_s6 = int_to_ptr.vmem [resolvable:$true] %s146_s6 }
  0x5e   :  { %p5285_p7 = scmp.ne.s32.totalorder %s121_s2, %s5284_s7  ;;  %p5289_p8 = scmp.lt.s32.totalorder %s121_s2, %s121_s2 }
  0x5f   :  { %p5290_p9 = scmp.lt.s32.totalorder %s5284_s7, %s5284_s7 }
  0x61   :  { %98 = dma.hbm_to_vmem [thread:$0]  %s6259_s1, 32, %s93_s12, [#allocation9], %s5375_s3, %s5375_s3, %s5376_s0  }
  0x62   :  { %p5291_p10 = por %p5290_p9, %p5289_p8 }
  0x64   :  { %p5292_p11 = pnand %p5291_p10, %p5285_p7 }
  0x66   :  { %5295 = shalt.err (!%p5292_p11)
}
  0x67   :  { %126 = dma.hbm_to_vmem [thread:$0]  %s6230_s10, 32, %s121_s2, [#allocation12], %s5375_s3, %s5375_s3, %s5376_s0  }
  0x68   :  { %s5304_s12 = scalar_lea.vmem %s147_s6, 32  ;;  %p5309_p13 = scmp.lt.s32.totalorder %s147_s6, %s147_s6 }
  0x69   :  { %p5305_p12 = scmp.ne.s32.totalorder %s147_s6, %s5304_s12  ;;  %p5310_p0 = scmp.lt.s32.totalorder %s5304_s12, %s5304_s12 }
  0x6b   :  { %p5311_p1 = por %p5310_p0, %p5309_p13 }
  0x6d   :  { %p5312_p2 = pnand %p5311_p1, %p5305_p12 }
  0x6f   :  { %5315 = shalt.err (!%p5312_p2)
}
  0x70   :  { %152 = dma.hbm_to_vmem [thread:$0]  %s6233_s13, 32, %s147_s6, [#allocation15], %s5375_s3, %s5375_s3, %s5376_s0  }
  0x71   :  { %s5383_s8 = smov [#allocation17]  }
  0x72   :  { %s172_s28 = sshll.u32 %s5383_s8, 4  ;;  %s173_s28 = int_to_ptr.vmem [resolvable:$true] %s172_s28 }
  0x73   :  { %s5324_s1 = scalar_lea.vmem %s173_s28, 512  ;;  %p5329_p4 = scmp.lt.s32.totalorder %s173_s28, %s173_s28 }
  0x74   :  { %p5325_p3 = scmp.ne.s32.totalorder %s173_s28, %s5324_s1  ;;  %p5330_p5 = scmp.lt.s32.totalorder %s5324_s1, %s5324_s1 }
  0x76   :  { %p5331_p6 = por %p5330_p5, %p5329_p4 }
  0x78   :  { %p5332_p7 = pnand %p5331_p6, %p5325_p3 }
  0x7a   :  { %5335 = shalt.err (!%p5332_p7)
}
  0x7b   :  { %178 = dma.hbm_to_vmem [thread:$0]  %s6241_s21, 512, %s173_s28, [#allocation18], %s5371_s25, %s5371_s25, %s5372_s5  }
  0x7c   :  { %5356 = dma.done.wait [#allocation3], 32  }
  0x7d   :  { %5357 = vsyncadd [#allocation3], 4294967264 }
  0x7e   :  { %5358 = dma.done.wait [#allocation6], 512  }
  0x7f   :  { %5359 = vsyncadd [#allocation6], 4294966784 }
  0x80   :  { %5360 = dma.done.wait [#allocation9], 64  }
  0x81   :  { %5361 = vsyncadd [#allocation9], 4294967232 }
  0x82   :  { %5362 = dma.done.wait [#allocation12], 64  }
  0x83   :  { %5363 = vsyncadd [#allocation12], 4294967232 }
  0x84   :  { %5364 = dma.done.wait [#allocation15], 64  }
  0x85   :  { %5365 = vsyncadd [#allocation15], 4294967232 }
  0x86   :  { %5366 = dma.done.wait [#allocation18], 512  }
  0x87   :  { %5367 = vsyncadd [#allocation18], 4294966784  ;;  %v211_v0 = vlaneseq  ;;  %v5384_v1 = vmov 0   ;;  %vm243_vm0 = vcmask 1041408   ;;  %v327_v4 = vld [vmem:[#allocation2] sm:$0x1] }
  0x88   :  { %5039 = vset.pattern.permute.xlu0 %v5384_v1  ;;  %v328_v5 = vld [vmem:[#allocation2 + $0x1] sm:$0x1]  ;;  %s6260_s0 = sld [smem:[#allocation27_spill]]  ;;  %vm329_vm1 = vcmp.eq.s32.totalorder %v327_v4, 0  ;;  %v5385_v22 = vmov 0.0   ;;  %vm236_vm8 = vcmask 408576  }
  0x89   :  { %v323_v2 = vshrl.u32 %v211_v0, 7  ;;  %vm330_vm2 = vcmp.eq.s32.totalorder %v328_v5, 0  ;;  %s6261_s6 = sld [smem:[#allocation30_spill]]  ;;  %v212_v9 = vand.u32 127, %v211_v0  ;;  %v331_v10 = vsel %vm329_vm1, 1, %v5384_v1  ;;  %v234_v28 = vld [vmem:[#allocation7] sm:$0xff] }
  0x8a   :  { %v332_v11 = vsel %vm330_vm2, 1, %v5384_v1  ;;  %v235_v29 = vld [vmem:[#allocation7 + $0x8] sm:$0xff]  ;;  %vm349_vm11 = vcmask 261120   ;;  %v4430_v57 = vld [vmem:[#allocation8] ss:$0 sm:$0xff]  ;;  %v486_v4 = vld [vmem:[%s6229_s9 + $0x8] sm:$0xff] }
  0x8b   :  { %v335_v3 = vsub.s32 0, %v323_v2  ;;  %vm324_vm3 = vcmp.gt.s32.totalorder %v212_v9, %v323_v2  ;;  %v488_v49 = vld [vmem:[%s6229_s9 + $0x18] sm:$0xff]  ;;  %v4431_v59 = vld [vmem:[#allocation10] ss:$0 sm:$0xff]  ;;  %vm5386_vm12 = vmmov 0   ;;  %vm577_vm13 = vcmask 64512  }
  0x8c   :  { %v5638_v2 = vld [vmem:[#allocation5] sm:$0xff]  ;;  %s5387_s2 = smov 96   ;;  %s5388_s29 = smov 120   ;;  %vm1931_vm14 = vcmask 195584   ;;  %vm1928_vm15 = vcmask 130048  }
  0x8d   :  { %v336_v13 = vrot.slane %v331_v10, %v335_v3  ;;  %v340_v14 = vrot.slane %v332_v11, %v335_v3  ;;  %v487_v3 = vld [vmem:[%s6229_s9 + $0x10] sm:$0xff]  ;;  %v485_v5 = vld [vmem:[%s6229_s9] sm:$0xff]  ;;  %s5389_s7 = smov 88   ;;  %s5390_s4 = smov 112  }
  0x8e   :  { %v213_v6 = vld [vmem:[%s6260_s0] sm:$0xff]  ;;  %v214_v12 = vld [vmem:[%s6260_s0 + $0x8] sm:$0xff]  ;;  %s5391_s24 = smov 80   ;;  %s5392_s12 = smov 104  }
  0x8f   :  { %216 = vperm.xlu0 %5039, %v213_v6   ;;  %v233_v7 = vld [vmem:[%s6261_s6 + $0x30] sm:$0x3]  ;;  %v232_v8 = vld [vmem:[%s6261_s6 + $0x28] sm:$0xff]  ;;  %v231_v15 = vld [vmem:[%s6261_s6 + $0x20] sm:$0xff]  ;;  %vm341_vm4 = vcmp.eq.s32.totalorder %v336_v13, 1  ;;  %vm342_vm5 = vcmp.eq.s32.totalorder %v340_v14, 1 }
  0x90   :  { %4699 = vmatprep.subr.msk.mxu0 %vm243_vm0, %v233_v7  ;;  %v230_v16 = vld [vmem:[%s6261_s6 + $0x18] sm:$0xff]  ;;  %vm5596_vm6 = vmor %vm341_vm4, %vm324_vm3  ;;  %v229_v18 = vld [vmem:[%s6261_s6 + $0x10] sm:$0xff]  ;;  %s5393_s30 = smov 72   ;;  %s5394_s0 = smov 24  }
  0x91   :  { %4700 = vmatpush3.msk.msra.mxu0 %vm243_vm0, %v233_v7  ;;  %vm5603_vm7 = vmor %vm342_vm5, %vm324_vm3  ;;  %v228_v20 = vld [vmem:[%s6261_s6 + $0x8] sm:$0xff]  ;;  %v227_v21 = vld [vmem:[%s6261_s6] sm:$0xff]  ;;  %s6266_s6 = sld [smem:[#allocation34_spill]]  ;;  %vm2179_vm0 = vcmask 523264  }
  0x92   :  { %4701 = vmatprep.subr.mxu0 %v232_v8  ;;  %v5652_v6 = vld [vmem:[#allocation5 + $0x8] sm:$0xff]  ;;  %v4432_v14 = vld [vmem:[#allocation11] ss:$0 sm:$0xff] }
  0x93   :  { %219 = vperm.xlu0 %5039, %v214_v12   ;;  %4702 = vmatpush3.msra.mxu0 %v232_v8 }
  0x94   :  { %4703 = vmatprep.subr.mxu0 %v231_v15 }
  0x95   :  { %4704 = vmatpush3.msra.mxu0 %v231_v15 }
  0x96   :  { %4705 = vmatprep.subr.mxu0 %v230_v16 }
  0x97   :  { %4706 = vmatpush3.msra.mxu0 %v230_v16  ;;  %v396_v45 = vld [vmem:[%s6266_s6 + $0x18] sm:$0xff]  ;;  %v395_v46 = vld [vmem:[%s6266_s6 + $0x10] sm:$0xff]  ;;  %v394_v47 = vld [vmem:[%s6266_s6 + $0x8] sm:$0xff] }
  0x98   :  { %4707 = vmatprep.subr.mxu0 %v229_v18  ;;  %4716 = vmatprep.subr.mxu1 %v396_v45  ;;  %v393_v48 = vld [vmem:[%s6266_s6] sm:$0xff] }
  0x99   :  { %4708 = vmatpush3.msra.mxu0 %v229_v18  ;;  %4717 = vmatpush3.msra.mxu1 %v396_v45 }
  0x9a   :  { %4709 = vmatprep.subr.mxu0 %v228_v20  ;;  %4718 = vmatprep.subr.mxu1 %v395_v46 }
  0x9b   :  { %4710 = vmatpush3.msra.mxu0 %v228_v20  ;;  %4719 = vmatpush3.msra.mxu1 %v395_v46 }
  0x9c   :  { %4711 = vmatprep.subr.mxu0 %v227_v21  ;;  %4720 = vmatprep.subr.mxu1 %v394_v47 }
  0x9d   :  { %4712 = vmatpush3.msra.mxu0 %v227_v21  ;;  %4721 = vmatpush3.msra.mxu1 %v394_v47 }
  0x9e   :  { %4748 = vmatprep.subr.mxu0 %v5385_v22  ;;  %4722 = vmatprep.subr.mxu1 %v393_v48 }
  0x9f   :  { %4723 = vmatpush3.msra.mxu1 %v393_v48 }
  0xa0   :  { %4727 = vmatprep.subr.mxu1 %v488_v49 }
 0x10a   :  { %v217_v23 = vpop.permute.xlu0 %216 }
 0x10b   :  { %vm221_vm9 = vcmp.eq.s32.totalorder %v212_v9, %v217_v23 }
 0x10c   :  { %v4425_v24 = vsel %vm221_vm9, 1.0, %v5385_v22 }
 0x10d   :  { %4713 = vmatprep.mubr.msk.f32.mxu0 %vm236_vm8, %v4425_v24 }
 0x10e   :  { %v220_v25 = vpop.permute.xlu0 %219 }
 0x10f   :  { %vm222_vm10 = vcmp.eq.s32.totalorder %v212_v9, %v220_v25  ;;  %v4435_v9 = vld [vmem:[#allocation13] ss:$0 sm:$0xff] }
 0x110   :  { %v4426_v26 = vsel %vm222_vm10, 1.0, %v5385_v22 }
 0x111   :  { %4714 = vmatmul.mubr.msk.f32.vlgmr.msra.gmra.mxu0 %vm236_vm8, %v4426_v26 }
 0x112   :  { %4750 = vmatprep.mubr.msk.f32.mxu0 %vm5386_vm12, %v5385_v22 }
 0x1d1   :  { %v4715_v27 = vpop.f32.mrf.mxu0 }
 0x1d2   :  { %v319_v32 = vadd.f32 %v4715_v27, %v235_v29 }
 0x1d3   :  { %v313_v30 = vpop.f32.mrf.mxu0 }
 0x1d4   :  { %v314_v31 = vadd.f32 %v313_v30, %v234_v28  ;;  %v353_v34 = vsel %vm349_vm11, %v319_v32, 0.0 }
 0x1d6   :  { %v350_v33 = vsel %vm349_vm11, %v314_v31, 0.0 }
 0x1d7   :  { %351 = vadd.xlane.f32.xlu1 %v350_v33 }
 0x1db   :  { %354 = vadd.xlane.f32.xlu1 %v353_v34 }
 0x260   :  { %v352_v35 = vpop.xlane.xlu1 %351 }
 0x261   :  { %v357_v36 = vmul.f32 0.03125, %v352_v35 }
 0x263   :  { %v359_v37 = vsub.f32 %v314_v31, %v357_v36 }
 0x264   :  { %v355_v38 = vpop.xlane.xlu1 %354 }
 0x265   :  { %v358_v39 = vmul.f32 0.03125, %v355_v38  ;;  %v361_v40 = vmul.f32 %v359_v37, %v359_v37 }
 0x267   :  { %v360_v41 = vsub.f32 %v319_v32, %v358_v39  ;;  %v363_v42 = vsel %vm349_vm11, %v361_v40, 0.0 }
 0x268   :  { %364 = vadd.xlane.f32.xlu0 %v363_v42 }
 0x269   :  { %v362_v43 = vmul.f32 %v360_v41, %v360_v41 }
 0x26b   :  { %v366_v44 = vsel %vm349_vm11, %v362_v43, 0.0 }
 0x26c   :  { %367 = vadd.xlane.f32.xlu1 %v366_v44 }
 0x2f1   :  { %v365_v50 = vpop.xlane.xlu0 %364 }
 0x2f2   :  { %v369_v51 = vmul.f32 0.03125, %v365_v50 }
 0x2f4   :  { %v371_v52 = vadd.f32 1e-12, %v369_v51 }
 0x2f5   :  { %v368_v53 = vpop.xlane.xlu1 %367 }
 0x2f6   :  { %5040 = vrsqrt.f32 %v371_v52  ;;  %v370_v54 = vmul.f32 0.03125, %v368_v53 }
 0x2f8   :  { %v372_v55 = vadd.f32 1e-12, %v370_v54 }
 0x2fa   :  { %5042 = vrsqrt.f32 %v372_v55 }
 0x303   :  { %v5041_v56 = vpop.eup %5040 }
 0x304   :  { %v375_v58 = vmul.f32 %v5041_v56, %v359_v37 }
 0x306   :  { %v383_v60 = vmul.f32 %v4430_v57, %v375_v58 }
 0x307   :  { %v5043_v61 = vpop.eup %5042 }
 0x308   :  { %v376_v62 = vmul.f32 %v5043_v61, %v360_v41  ;;  %v391_v63 = vadd.f32 %v4431_v59, %v383_v60 }
 0x30a   :  { %v384_v0 = vmul.f32 %v4430_v57, %v376_v62  ;;  %4724 = vmatprep.mubr.msk.f32.mxu1 %vm349_vm11, %v391_v63 }
 0x30c   :  { %v392_v1 = vadd.f32 %v4431_v59, %v384_v0 }
 0x30e   :  { %4725 = vmatmul.mubr.msk.f32.vlgmr.msra.gmra.mxu1 %vm349_vm11, %v392_v1 }
 0x30f   :  { %4728 = vmatpush3.msra.mxu1 %v488_v49  ;;  %4735 = vmatprep.mubr.msk.f32.mxu1 %vm349_vm11, %v5638_v2 }
 0x310   :  { %4729 = vmatprep.subr.mxu1 %v487_v3 }
 0x311   :  { %4730 = vmatpush3.msra.mxu1 %v487_v3 }
 0x312   :  { %4731 = vmatprep.subr.mxu1 %v486_v4 }
 0x313   :  { %4732 = vmatpush3.msra.mxu1 %v486_v4 }
 0x314   :  { %4733 = vmatprep.subr.mxu1 %v485_v5 }
 0x315   :  { %4734 = vmatpush3.msra.mxu1 %v485_v5 }
 0x316   :  { %4736 = vmatmul.mubr.msk.f32.vlgmr.msra.gmra.mxu1 %vm349_vm11, %v5652_v6  ;;  %4738 = vmatprep.subr.mxu1 %v5385_v22 }
 0x317   :  { %4740 = vmatprep.mubr.msk.f32.mxu1 %vm5386_vm12, %v5385_v22 }
 0x3ce   :  { %v4726_v7 = vpop.f32.mrf.mxu1 }
 0x3cf   :  { %v5678_v16 = vadd.f32 %v4726_v7, %v4432_v14 }
 0x3d0   :  { %v476_v8 = vpop.f32.mrf.mxu1 }
 0x3d1   :  { %v5669_v15 = vadd.f32 %v4432_v14, %v476_v8 }
 0x3d6   :  { %v4737_v10 = vpop.f32.mrf.mxu1 }
 0x3d7   :  { %v5661_v11 = vadd.f32 %v4737_v10, %v4435_v9 }
 0x3d8   :  { %v568_v12 = vpop.f32.mrf.mxu1 }
 0x3d9   :  { %v5663_v13 = vadd.f32 %v4435_v9, %v568_v12  ;;  %830 = vrot.lane.b32.xlu0 %v5661_v11, %s5387_s2 }
 0x3db   :  { %4739 = vmatpush3.xpose.msk.msra.mxu1 %vm577_vm13, %v5663_v13 }
 0x3dc   :  { %4743 = vmatprep.subr.mxu1 %v5385_v22 }
 0x3de   :  { %4741 = vmatmul.mubr.msk.f32.vlgmr.msra.gmra.mxu1 %vm577_vm13, %v5669_v15 }
 0x3df   :  { %4744 = vmatpush3.xpose.msk.msra.mxu1 %vm577_vm13, %v5661_v11  ;;  %4745 = vmatprep.mubr.msk.f32.mxu1 %vm5386_vm12, %v5385_v22 }
 0x3e0   :  { %4753 = vmatprep.subr.mxu1 %v5385_v22 }
 0x3e2   :  { %4746 = vmatmul.mubr.msk.f32.vlgmr.msra.gmra.mxu1 %vm577_vm13, %v5678_v16 }
 0x3e3   :  { %4755 = vmatprep.mubr.msk.f32.mxu1 %vm5386_vm12, %v5385_v22 }
 0x44b   :  { %v831_v18 = vpop.permute.xlu0 %830 }
 0x44c   :  { %4754 = vmatpush3.msra.mxu1 %v831_v18 }
 0x44d   :  { %4763 = vmatprep.subr.mxu1 %v5385_v22 }
 0x49e   :  { %v650_v20 = vpop.f32.mrf.mxu1 }
 0x49f   :  { %v730_v21 = vsel %vm5596_vm6, -1e+09, %v650_v20 }
 0x4a0   :  { %v4742_v23 = vpop.f32.mrf.mxu1  ;;  %v732_v24 = vsel %vm577_vm13, %v730_v21, -inf }
 0x4a1   :  { %733 = vmax.xlane.f32.xlu1 %v732_v24 }
 0x4a2   :  { %v726_v25 = vpop.f32.mrf.mxu1 }
 0x4a3   :  { %v731_v26 = vsel %vm5603_vm7, -1e+09, %v726_v25 }
 0x4a4   :  { %v4747_v27 = vpop.f32.mrf.mxu1  ;;  %v735_v28 = vsel %vm577_vm13, %v731_v26, -inf }
 0x4a5   :  { %736 = vmax.xlane.f32.xlu1 %v735_v28 }
 0x4b6   :  { %754 = vrot.lane.b32.xlu1 %v5663_v13, %s5387_s2 }
 0x4ba   :  { %908 = vrot.lane.b32.xlu1 %v5663_v13, %s5388_s29 }
 0x4be   :  { %986 = vrot.lane.b32.xlu1 %v5661_v11, %s5388_s29 }
 0x4c2   :  { %906 = vrot.lane.b32.xlu1 %v5669_v15, %s5388_s29 }
 0x52a   :  { %v734_v29 = vpop.xlane.xlu1 %733 }
 0x52b   :  { %v738_v30 = vsub.f32 %v730_v21, %v734_v29 }
 0x52d   :  { %v740_v31 = vmul.f32 1.442695, %v738_v30 }
 0x52e   :  { %v737_v32 = vpop.xlane.xlu1 %736 }
 0x52f   :  { %5044 = vpow2.f32 %v740_v31  ;;  %v739_v33 = vsub.f32 %v731_v26, %v737_v32 }
 0x531   :  { %v742_v34 = vmul.f32 1.442695, %v739_v33 }
 0x532   :  { %v755_v35 = vpop.permute.xlu1 %754 }
 0x533   :  { %5046 = vpow2.f32 %v742_v34  ;;  %4749 = vmatpush3.msra.mxu0 %v755_v35 }
 0x534   :  { %4758 = vmatprep.subr.mxu0 %v5385_v22 }
 0x536   :  { %v909_v40 = vpop.permute.xlu1 %908 }
 0x53a   :  { %v987_v41 = vpop.permute.xlu1 %986 }
 0x53c   :  { %v5045_v36 = vpop.eup %5044 }
 0x53d   :  { %v744_v37 = vsel %vm577_vm13, %v5045_v36, 0.0 }
 0x53e   :  { %745 = vadd.xlane.f32.xlu1 %v744_v37  ;;  %v907_v42 = vpop.permute.xlu1 %906 }
 0x540   :  { %v5047_v38 = vpop.eup %5046 }
 0x541   :  { %v747_v39 = vsel %vm577_vm13, %v5047_v38, 0.0 }
 0x542   :  { %748 = vadd.xlane.f32.xlu1 %v747_v39 }
 0x553   :  { %984 = vrot.lane.b32.xlu1 %v5678_v16, %s5388_s29 }
 0x5c7   :  { %v746_v43 = vpop.xlane.xlu1 %745 }
 0x5c8   :  { %5048 = vrcp.f32 %v746_v43 }
 0x5cb   :  { %v749_v44 = vpop.xlane.xlu1 %748 }
 0x5cc   :  { %5050 = vrcp.f32 %v749_v44 }
 0x5cf   :  { %v985_v49 = vpop.permute.xlu1 %984 }
 0x5d5   :  { %v5049_v45 = vpop.eup %5048 }
 0x5d6   :  { %v751_v46 = vmul.f32 %v5049_v45, %v5045_v36 }
 0x5d8   :  { %4751 = vmatmul.mubr.msk.f32.vlgmr.msra.gmra.mxu0 %vm577_vm13, %v751_v46 }
 0x5d9   :  { %v5051_v47 = vpop.eup %5050  ;;  %4759 = vmatpush3.xpose.msk.msra.mxu0 %vm577_vm13, %v909_v40  ;;  %4760 = vmatprep.mubr.msk.f32.mxu0 %vm5386_vm12, %v5385_v22 }
 0x5da   :  { %v753_v48 = vmul.f32 %v5051_v47, %v5047_v38  ;;  %4768 = vmatprep.subr.mxu0 %v5385_v22 }
 0x5dc   :  { %4756 = vmatmul.mubr.msk.f32.vlgmr.msra.gmra.mxu1 %vm577_vm13, %v753_v48  ;;  %4761 = vmatmul.mubr.msk.f32.vlgmr.msra.gmra.mxu0 %vm577_vm13, %v907_v42 }
 0x5dd   :  { %4764 = vmatpush3.xpose.msk.msra.mxu1 %vm577_vm13, %v987_v41  ;;  %4765 = vmatprep.mubr.msk.f32.mxu1 %vm5386_vm12, %v5385_v22 }
 0x5de   :  { %4773 = vmatprep.subr.mxu1 %v5385_v22  ;;  %4770 = vmatprep.mubr.msk.f32.mxu0 %vm5386_vm12, %v5385_v22 }
 0x5e0   :  { %4766 = vmatmul.mubr.msk.f32.vlgmr.msra.gmra.mxu1 %vm577_vm13, %v985_v49 }
 0x5e1   :  { %4775 = vmatprep.mubr.msk.f32.mxu1 %vm5386_vm12, %v5385_v22 }
 0x698   :  { %v5721_v50 = vpop.f32.mrf.mxu0 }
 0x69a   :  { %v4752_v51 = vpop.f32.mrf.mxu0 }
 0x69c   :  { %v5723_v52 = vpop.f32.mrf.mxu1  ;;  %v980_v53 = vpop.f32.mrf.mxu0 }
 0x69d   :  { %v1062_v54 = vsel %vm5596_vm6, -1e+09, %v980_v53 }
 0x69e   :  { %v4757_v55 = vpop.f32.mrf.mxu1  ;;  %v4762_v56 = vpop.f32.mrf.mxu0  ;;  %v1064_v57 = vsel %vm577_vm13, %v1062_v54, -inf }
 0x69f   :  { %1065 = vmax.xlane.f32.xlu0 %v1064_v57 }
 0x6a0   :  { %v1058_v58 = vpop.f32.mrf.mxu1 }
 0x6a1   :  { %v1063_v59 = vsel %vm5603_vm7, -1e+09, %v1058_v58 }
 0x6a2   :  { %v4767_v60 = vpop.f32.mrf.mxu1  ;;  %v1067_v61 = vsel %vm577_vm13, %v1063_v59, -inf }
 0x6a3   :  { %1068 = vmax.xlane.f32.xlu1 %v1067_v61 }
 0x6b4   :  { %1086 = vrot.lane.b32.xlu1 %v5663_v13, %s5389_s7 }
 0x6b5   :  { %1162 = vrot.lane.b32.xlu0 %v5661_v11, %s5389_s7 }
 0x6b8   :  { %1240 = vrot.lane.b32.xlu1 %v5663_v13, %s5390_s4 }
 0x6bc   :  { %1318 = vrot.lane.b32.xlu1 %v5661_v11, %s5390_s4 }
 0x6c0   :  { %1316 = vrot.lane.b32.xlu1 %v5678_v16, %s5390_s4 }
 0x728   :  { %v1066_v62 = vpop.xlane.xlu0 %1065 }
 0x729   :  { %v1070_v63 = vsub.f32 %v1062_v54, %v1066_v62 }
 0x72b   :  { %v1072_v0 = vmul.f32 1.442695, %v1070_v63 }
 0x72c   :  { %v1163_v1 = vpop.permute.xlu0 %1162  ;;  %v1069_v3 = vpop.xlane.xlu1 %1068 }
 0x72d   :  { %5052 = vpow2.f32 %v1072_v0  ;;  %v1071_v4 = vsub.f32 %v1063_v59, %v1069_v3  ;;  %4774 = vmatpush3.msra.mxu1 %v1163_v1 }
 0x72e   :  { %4783 = vmatprep.subr.mxu1 %v5385_v22 }
 0x72f   :  { %v1074_v5 = vmul.f32 1.442695, %v1071_v4 }
 0x730   :  { %v1087_v7 = vpop.permute.xlu1 %1086 }
 0x731   :  { %5054 = vpow2.f32 %v1074_v5  ;;  %4769 = vmatpush3.msra.mxu0 %v1087_v7 }
 0x732   :  { %4778 = vmatprep.subr.mxu0 %v5385_v22 }
 0x734   :  { %v1241_v20 = vpop.permute.xlu1 %1240 }
 0x738   :  { %v1319_v25 = vpop.permute.xlu1 %1318 }
 0x73a   :  { %v5053_v8 = vpop.eup %5052 }
 0x73b   :  { %v1076_v9 = vsel %vm577_vm13, %v5053_v8, 0.0 }
 0x73c   :  { %1077 = vadd.xlane.f32.xlu0 %v1076_v9  ;;  %v1317_v28 = vpop.permute.xlu1 %1316 }
 0x73e   :  { %v5055_v10 = vpop.eup %5054 }
 0x73f   :  { %v1079_v12 = vsel %vm577_vm13, %v5055_v10, 0.0 }
 0x740   :  { %1080 = vadd.xlane.f32.xlu0 %v1079_v12 }
 0x756   :  { %1238 = vrot.lane.b32.xlu0 %v5669_v15, %s5390_s4 }
 0x7c5   :  { %v1078_v14 = vpop.xlane.xlu0 %1077 }
 0x7c6   :  { %5056 = vrcp.f32 %v1078_v14 }
 0x7c9   :  { %v1081_v18 = vpop.xlane.xlu0 %1080 }
 0x7ca   :  { %5058 = vrcp.f32 %v1081_v18 }
 0x7cd   :  { %v1239_v27 = vpop.permute.xlu0 %1238 }
 0x7d3   :  { %v5057_v21 = vpop.eup %5056 }
 0x7d4   :  { %v1083_v23 = vmul.f32 %v5057_v21, %v5053_v8 }
 0x7d6   :  { %4771 = vmatmul.mubr.msk.f32.vlgmr.msra.gmra.mxu0 %vm577_vm13, %v1083_v23 }
 0x7d7   :  { %v5059_v24 = vpop.eup %5058  ;;  %4779 = vmatpush3.xpose.msk.msra.mxu0 %vm577_vm13, %v1241_v20  ;;  %4780 = vmatprep.mubr.msk.f32.mxu0 %vm5386_vm12, %v5385_v22 }
 0x7d8   :  { %v1085_v26 = vmul.f32 %v5059_v24, %v5055_v10  ;;  %4788 = vmatprep.subr.mxu0 %v5385_v22 }
 0x7da   :  { %4776 = vmatmul.mubr.msk.f32.vlgmr.msra.gmra.mxu1 %vm577_vm13, %v1085_v26  ;;  %4781 = vmatmul.mubr.msk.f32.vlgmr.msra.gmra.mxu0 %vm577_vm13, %v1239_v27 }
 0x7db   :  { %4784 = vmatpush3.xpose.msk.msra.mxu1 %vm577_vm13, %v1319_v25  ;;  %4785 = vmatprep.mubr.msk.f32.mxu1 %vm5386_vm12, %v5385_v22 }
 0x7dc   :  { %4793 = vmatprep.subr.mxu1 %v5385_v22  ;;  %4790 = vmatprep.mubr.msk.f32.mxu0 %vm5386_vm12, %v5385_v22 }
 0x7de   :  { %4786 = vmatmul.mubr.msk.f32.vlgmr.msra.gmra.mxu1 %vm577_vm13, %v1317_v28 }
 0x7df   :  { %4795 = vmatprep.mubr.msk.f32.mxu1 %vm5386_vm12, %v5385_v22 }
 0x896   :  { %v5763_v29 = vpop.f32.mrf.mxu0 }
 0x898   :  { %v4772_v30 = vpop.f32.mrf.mxu0 }
 0x89a   :  { %v5765_v31 = vpop.f32.mrf.mxu1  ;;  %v1312_v32 = vpop.f32.mrf.mxu0 }
 0x89b   :  { %v1394_v33 = vsel %vm5596_vm6, -1e+09, %v1312_v32 }
 0x89c   :  { %v4777_v34 = vpop.f32.mrf.mxu1  ;;  %v4782_v35 = vpop.f32.mrf.mxu0  ;;  %v1396_v36 = vsel %vm577_vm13, %v1394_v33, -inf }
 0x89d   :  { %1397 = vmax.xlane.f32.xlu0 %v1396_v36 }
 0x89e   :  { %v1390_v37 = vpop.f32.mrf.mxu1 }
 0x89f   :  { %v1395_v38 = vsel %vm5603_vm7, -1e+09, %v1390_v37  ;;  %v1936_v37 = vld [vmem:[%s6231_s11 + $0x10] sm:$0xff] }
 0x8a0   :  { %v4787_v39 = vpop.f32.mrf.mxu1  ;;  %v1399_v40 = vsel %vm577_vm13, %v1395_v38, -inf }
 0x8a1   :  { %1400 = vmax.xlane.f32.xlu1 %v1399_v40  ;;  %v1934_v39 = vld [vmem:[%s6231_s11] sm:$0xff] }
 0x8b2   :  { %1418 = vrot.lane.b32.xlu1 %v5663_v13, %s5391_s24 }
 0x8b3   :  { %1494 = vrot.lane.b32.xlu0 %v5661_v11, %s5391_s24 }
 0x8b6   :  { %1572 = vrot.lane.b32.xlu1 %v5663_v13, %s5392_s12 }
 0x8ba   :  { %1650 = vrot.lane.b32.xlu1 %v5661_v11, %s5392_s12 }
 0x8be   :  { %1648 = vrot.lane.b32.xlu1 %v5678_v16, %s5392_s12 }
 0x926   :  { %v1398_v41 = vpop.xlane.xlu0 %1397 }
 0x927   :  { %v1402_v42 = vsub.f32 %v1394_v33, %v1398_v41 }
 0x929   :  { %v1404_v43 = vmul.f32 1.442695, %v1402_v42 }
 0x92a   :  { %v1495_v44 = vpop.permute.xlu0 %1494  ;;  %v1401_v45 = vpop.xlane.xlu1 %1400 }
 0x92b   :  { %5060 = vpow2.f32 %v1404_v43  ;;  %v1403_v46 = vsub.f32 %v1395_v38, %v1401_v45  ;;  %4794 = vmatpush3.msra.mxu1 %v1495_v44  ;;  %v1935_v38 = vld [vmem:[%s6231_s11 + $0x8] sm:$0xff] }
 0x92c   :  { %4803 = vmatprep.subr.mxu1 %v5385_v22 }
 0x92d   :  { %v1406_v47 = vmul.f32 1.442695, %v1403_v46 }
 0x92e   :  { %v1419_v48 = vpop.permute.xlu1 %1418 }
 0x92f   :  { %5062 = vpow2.f32 %v1406_v47  ;;  %4789 = vmatpush3.msra.mxu0 %v1419_v48 }
 0x930   :  { %4798 = vmatprep.subr.mxu0 %v5385_v22 }
 0x932   :  { %v1573_v56 = vpop.permute.xlu1 %1572 }
 0x936   :  { %v1651_v60 = vpop.permute.xlu1 %1650 }
 0x938   :  { %v5061_v49 = vpop.eup %5060 }
 0x939   :  { %v1408_v51 = vsel %vm577_vm13, %v5061_v49, 0.0 }
 0x93a   :  { %1409 = vadd.xlane.f32.xlu0 %v1408_v51  ;;  %v1649_v62 = vpop.permute.xlu1 %1648 }
 0x93c   :  { %v5063_v16 = vpop.eup %5062 }
 0x93d   :  { %v1411_v53 = vsel %vm577_vm13, %v5063_v16, 0.0 }
 0x93e   :  { %1412 = vadd.xlane.f32.xlu0 %v1411_v53 }
 0x954   :  { %1570 = vrot.lane.b32.xlu0 %v5669_v15, %s5392_s12 }
 0x9c3   :  { %v1410_v54 = vpop.xlane.xlu0 %1409 }
 0x9c4   :  { %5064 = vrcp.f32 %v1410_v54 }
 0x9c7   :  { %v1413_v55 = vpop.xlane.xlu0 %1412 }
 0x9c8   :  { %5066 = vrcp.f32 %v1413_v55 }
 0x9cb   :  { %v1571_v15 = vpop.permute.xlu0 %1570 }
 0x9d1   :  { %v5065_v57 = vpop.eup %5064 }
 0x9d2   :  { %v1415_v58 = vmul.f32 %v5065_v57, %v5061_v49 }
 0x9d4   :  { %4791 = vmatmul.mubr.msk.f32.vlgmr.msra.gmra.mxu0 %vm577_vm13, %v1415_v58 }
 0x9d5   :  { %v5067_v59 = vpop.eup %5066  ;;  %4799 = vmatpush3.xpose.msk.msra.mxu0 %vm577_vm13, %v1573_v56  ;;  %4800 = vmatprep.mubr.msk.f32.mxu0 %vm5386_vm12, %v5385_v22 }
 0x9d6   :  { %v1417_v61 = vmul.f32 %v5067_v59, %v5063_v16  ;;  %4808 = vmatprep.subr.mxu0 %v5385_v22 }
 0x9d8   :  { %4796 = vmatmul.mubr.msk.f32.vlgmr.msra.gmra.mxu1 %vm577_vm13, %v1417_v61  ;;  %4801 = vmatmul.mubr.msk.f32.vlgmr.msra.gmra.mxu0 %vm577_vm13, %v1571_v15 }
 0x9d9   :  { %4804 = vmatpush3.xpose.msk.msra.mxu1 %vm577_vm13, %v1651_v60  ;;  %4805 = vmatprep.mubr.msk.f32.mxu1 %vm5386_vm12, %v5385_v22 }
 0x9da   :  { %4813 = vmatprep.subr.mxu1 %v5385_v22  ;;  %4810 = vmatprep.mubr.msk.f32.mxu0 %vm5386_vm12, %v5385_v22 }
 0x9dc   :  { %4806 = vmatmul.mubr.msk.f32.vlgmr.msra.gmra.mxu1 %vm577_vm13, %v1649_v62 }
 0x9dd   :  { %4815 = vmatprep.mubr.msk.f32.mxu1 %vm5386_vm12, %v5385_v22 }
 0xa94   :  { %v1490_v63 = vpop.f32.mrf.mxu0 }
 0xa96   :  { %v4792_v0 = vpop.f32.mrf.mxu0 }
 0xa98   :  { %v1566_v1 = vpop.f32.mrf.mxu1  ;;  %v1644_v3 = vpop.f32.mrf.mxu0 }
 0xa99   :  { %v1726_v4 = vsel %vm5596_vm6, -1e+09, %v1644_v3 }
 0xa9a   :  { %v4797_v5 = vpop.f32.mrf.mxu1  ;;  %v4802_v7 = vpop.f32.mrf.mxu0  ;;  %v1728_v8 = vsel %vm577_vm13, %v1726_v4, -inf }
 0xa9b   :  { %1729 = vmax.xlane.f32.xlu0 %v1728_v8 }
 0xa9c   :  { %v1722_v9 = vpop.f32.mrf.mxu1 }
 0xa9d   :  { %v1727_v10 = vsel %vm5603_vm7, -1e+09, %v1722_v9  ;;  %v2073_v9 = vld [vmem:[%s6235_s15 + $0x18] sm:$0xff] }
 0xa9e   :  { %v4807_v12 = vpop.f32.mrf.mxu1  ;;  %v1731_v14 = vsel %vm577_vm13, %v1727_v10, -inf }
 0xa9f   :  { %1732 = vmax.xlane.f32.xlu1 %v1731_v14  ;;  %v2071_v12 = vld [vmem:[%s6235_s15 + $0x8] sm:$0xff]  ;;  %v2070_v14 = vld [vmem:[%s6235_s15] sm:$0xff] }
 0xab0   :  { %1750 = vrot.lane.b32.xlu1 %v5663_v13, %s5393_s30 }
 0xab4   :  { %1904 = vrot.lane.b32.xlu1 %v5763_v29, %s5372_s5 }
 0xab8   :  { %1906 = vrot.lane.b32.xlu1 %v5765_v31, %s5372_s5 }
 0xabc   :  { %1914 = vrot.lane.b32.xlu1 %v1566_v1, %s5375_s3 }
 0xb24   :  { %v1730_v18 = vpop.xlane.xlu0 %1729 }
 0xb25   :  { %v1734_v20 = vsub.f32 %v1726_v4, %v1730_v18  ;;  %v2171_v18 = vld [vmem:[%s6237_s17 + $0x38] sm:$0xff] }
 0xb27   :  { %v1736_v21 = vmul.f32 1.442695, %v1734_v20  ;;  %v2170_v20 = vld [vmem:[%s6237_s17 + $0x30] sm:$0xff] }
 0xb28   :  { %v1733_v23 = vpop.xlane.xlu1 %1732 }
 0xb29   :  { %5068 = vpow2.f32 %v1736_v21  ;;  %v1735_v24 = vsub.f32 %v1727_v10, %v1733_v23  ;;  %v2072_v10 = vld [vmem:[%s6235_s15 + $0x10] sm:$0xff]  ;;  %v2169_v21 = vld [vmem:[%s6237_s17 + $0x28] sm:$0xff]  ;;  %v2168_v23 = vld [vmem:[%s6237_s17 + $0x20] sm:$0xff] }
 0xb2b   :  { %v1738_v25 = vmul.f32 1.442695, %v1735_v24 }
 0xb2c   :  { %v1751_v26 = vpop.permute.xlu1 %1750 }
 0xb2d   :  { %5070 = vpow2.f32 %v1738_v25  ;;  %4809 = vmatpush3.msra.mxu0 %v1751_v26 }
 0xb30   :  { %v1905_v44 = vpop.permute.xlu1 %1904 }
 0xb31   :  { %v1926_v47 = vsel %vm577_vm13, %v5721_v50, %v1905_v44  ;;  %v4462_v50 = vld [vmem:[#allocation14] ss:$0 sm:$0xff] }
 0xb34   :  { %v1907_v45 = vpop.permute.xlu1 %1906 }
 0xb35   :  { %v1927_v53 = vsel %vm577_vm13, %v5723_v52, %v1907_v45 }
 0xb36   :  { %v5069_v27 = vpop.eup %5068 }
 0xb37   :  { %v1740_v13 = vsel %vm577_vm13, %v5069_v27, 0.0 }
 0xb38   :  { %1741 = vadd.xlane.f32.xlu0 %v1740_v13  ;;  %v1915_v48 = vpop.permute.xlu1 %1914 }
 0xb39   :  { %v1930_v54 = vsel %vm1928_vm15, %v1927_v53, %v1915_v48 }
 0xb3a   :  { %v5071_v28 = vpop.eup %5070 }
 0xb3b   :  { %v1743_v29 = vsel %vm577_vm13, %v5071_v28, 0.0 }
 0xb3c   :  { %1744 = vadd.xlane.f32.xlu0 %v1743_v29 }
 0xb52   :  { %1826 = vrot.lane.b32.xlu0 %v5661_v11, %s5393_s30  ;;  %v1937_v11 = vld [vmem:[%s6231_s11 + $0x18] sm:$0xff] }
 0xb53   :  { %4818 = vmatprep.subr.mxu0 %v1937_v11 }
 0xb56   :  { %1912 = vrot.lane.b32.xlu0 %v1490_v63, %s5375_s3 }
 0xbc1   :  { %v1742_v30 = vpop.xlane.xlu0 %1741 }
 0xbc2   :  { %5072 = vrcp.f32 %v1742_v30  ;;  %v4465_v30 = vld [vmem:[#allocation16] ss:$0 sm:$0xff] }
 0xbc5   :  { %v1745_v31 = vpop.xlane.xlu0 %1744 }
 0xbc6   :  { %5074 = vrcp.f32 %v1745_v31 }
 0xbc9   :  { %v1827_v32 = vpop.permute.xlu0 %1826 }
 0xbca   :  { %4814 = vmatpush3.msra.mxu1 %v1827_v32  ;;  %v4466_v32 = vld [vmem:[%s6234_s14] ss:$0 sm:$0xff] }
 0xbcb   :  { %4829 = vmatprep.subr.mxu1 %v2073_v9 }
 0xbcd   :  { %v1913_v46 = vpop.permute.xlu0 %1912 }
 0xbce   :  { %v1929_v49 = vsel %vm1928_vm15, %v1926_v47, %v1913_v46 }
 0xbcf   :  { %v5073_v33 = vpop.eup %5072 }
 0xbd0   :  { %v1747_v34 = vmul.f32 %v5073_v33, %v5069_v27 }
 0xbd2   :  { %4811 = vmatmul.mubr.msk.f32.vlgmr.msra.gmra.mxu0 %vm577_vm13, %v1747_v34 }
 0xbd3   :  { %v5075_v35 = vpop.eup %5074  ;;  %4819 = vmatpush3.msra.mxu0 %v1937_v11 }
 0xbd4   :  { %v1749_v36 = vmul.f32 %v5075_v35, %v5071_v28  ;;  %4820 = vmatprep.subr.mxu0 %v1936_v37 }
 0xbd5   :  { %4821 = vmatpush3.msra.mxu0 %v1936_v37 }
 0xbd6   :  { %4816 = vmatmul.mubr.msk.f32.vlgmr.msra.gmra.mxu1 %vm577_vm13, %v1749_v36  ;;  %4822 = vmatprep.subr.mxu0 %v1935_v38 }
 0xbd7   :  { %4823 = vmatpush3.msra.mxu0 %v1935_v38  ;;  %4830 = vmatpush3.msra.mxu1 %v2073_v9  ;;  %v2167_v38 = vld [vmem:[%s6237_s17 + $0x18] sm:$0xff]  ;;  %v4473_v9 = vld [vmem:[%s6239_s19] ss:$0 sm:$0xff] }
 0xbd8   :  { %4824 = vmatprep.subr.mxu0 %v1934_v39  ;;  %4831 = vmatprep.subr.mxu1 %v2072_v10 }
 0xbd9   :  { %4825 = vmatpush3.msra.mxu0 %v1934_v39  ;;  %4832 = vmatpush3.msra.mxu1 %v2072_v10  ;;  %v2166_v39 = vld [vmem:[%s6237_s17 + $0x10] sm:$0xff] }
 0xbda   :  { %4833 = vmatprep.subr.mxu1 %v2071_v12  ;;  %4840 = vmatprep.subr.mxu0 %v2171_v18 }
 0xbdb   :  { %4834 = vmatpush3.msra.mxu1 %v2071_v12 }
 0xbdc   :  { %4835 = vmatprep.subr.mxu1 %v2070_v14 }
 0xbdd   :  { %4836 = vmatpush3.msra.mxu1 %v2070_v14  ;;  %v4474_v14 = vld [vmem:[%s6240_s20] ss:$0 sm:$0xff] }
 0xc92   :  { %v1822_v40 = vpop.f32.mrf.mxu0 }
 0xc93   :  { %1920 = vrot.lane.b32.xlu0 %v1822_v40, %s5394_s0  ;;  %v2165_v40 = vld [vmem:[%s6237_s17 + $0x8] sm:$0xff] }
 0xc94   :  { %v4812_v41 = vpop.f32.mrf.mxu0 }
 0xc95   :  { %v2164_v41 = vld [vmem:[%s6237_s17] sm:$0xff] }
 0xc96   :  { %v1898_v42 = vpop.f32.mrf.mxu1 }
 0xc97   :  { %1922 = vrot.lane.b32.xlu1 %v1898_v42, %s5394_s0  ;;  %v4467_v42 = vld [vmem:[%s6236_s16] ss:$0 sm:$0xff] }
 0xc98   :  { %v4817_v43 = vpop.f32.mrf.mxu1 }
 0xd05   :  { %v1921_v51 = vpop.permute.xlu0 %1920 }
 0xd06   :  { %v1932_v16 = vsel %vm1931_vm14, %v1929_v49, %v1921_v51  ;;  %v4470_v49 = vld [vmem:[%s6238_s18] ss:$0 sm:$0xff] }
 0xd07   :  { %4826 = vmatprep.mubr.msk.f32.mxu0 %vm349_vm11, %v1932_v16 }
 0xd09   :  { %v1923_v55 = vpop.permute.xlu1 %1922 }
 0xd0a   :  { %v1933_v56 = vsel %vm1931_vm14, %v1930_v54, %v1923_v55 }
 0xd0b   :  { %4827 = vmatmul.mubr.msk.f32.vlgmr.msra.gmra.mxu0 %vm349_vm11, %v1933_v56 }
 0xd0c   :  { %4841 = vmatpush3.msra.mxu0 %v2171_v18 }
 0xd0d   :  { %4842 = vmatprep.subr.mxu0 %v2170_v20 }
 0xd0e   :  { %4843 = vmatpush3.msra.mxu0 %v2170_v20 }
 0xd0f   :  { %4844 = vmatprep.subr.mxu0 %v2169_v21 }
 0xd10   :  { %4845 = vmatpush3.msra.mxu0 %v2169_v21 }
 0xd11   :  { %4846 = vmatprep.subr.mxu0 %v2168_v23 }
 0xd12   :  { %4847 = vmatpush3.msra.mxu0 %v2168_v23 }
 0xd13   :  { %4848 = vmatprep.subr.mxu0 %v2167_v38 }
 0xd14   :  { %4849 = vmatpush3.msra.mxu0 %v2167_v38  ;;  %v4477_v38 = vld [vmem:[%s6266_s6 + $0x20] sm:$0xff] }
 0xd15   :  { %4850 = vmatprep.subr.mxu0 %v2166_v39 }
 0xd16   :  { %4851 = vmatpush3.msra.mxu0 %v2166_v39  ;;  %v4487_v39 = vld [vmem:[%s6229_s9 + $0x38] sm:$0xff] }
 0xd17   :  { %4852 = vmatprep.subr.mxu0 %v2165_v40 }
 0xd18   :  { %4853 = vmatpush3.msra.mxu0 %v2165_v40 }
 0xd19   :  { %4854 = vmatprep.subr.mxu0 %v2164_v41 }
 0xd1a   :  { %4855 = vmatpush3.msra.mxu0 %v2164_v41 }
 0xd1b   :  { %4881 = vmatprep.subr.mxu0 %v5385_v22 }
 0xdcb   :  { %v4828_v57 = vpop.f32.mrf.mxu0 }
 0xdcc   :  { %v2023_v58 = vadd.f32 %v4828_v57, %v4462_v50 }
 0xdcd   :  { %v2017_v59 = vpop.f32.mrf.mxu0 }
 0xdce   :  { %v2018_v60 = vadd.f32 %v4462_v50, %v2017_v59  ;;  %v2031_v61 = vsel %vm349_vm11, %v2023_v58, 0.0 }
 0xdcf   :  { %2032 = vadd.xlane.f32.xlu1 %v2031_v61 }
 0xdd0   :  { %v2028_v15 = vsel %vm349_vm11, %v2018_v60, 0.0 }
 0xdd1   :  { %2029 = vadd.xlane.f32.xlu0 %v2028_v15 }
 0xe58   :  { %v2033_v62 = vpop.xlane.xlu1 %2032 }
 0xe59   :  { %v2035_v52 = vmul.f32 0.03125, %v2033_v62 }
 0xe5a   :  { %v2030_v63 = vpop.xlane.xlu0 %2029 }
 0xe5b   :  { %v2034_v0 = vmul.f32 0.03125, %v2030_v63  ;;  %v2037_v1 = vsub.f32 %v2023_v58, %v2035_v52 }
 0xe5d   :  { %v2036_v3 = vsub.f32 %v2018_v60, %v2034_v0  ;;  %v2039_v7 = vmul.f32 %v2037_v1, %v2037_v1 }
 0xe5f   :  { %v2038_v4 = vmul.f32 %v2036_v3, %v2036_v3  ;;  %v2043_v8 = vsel %vm349_vm11, %v2039_v7, 0.0 }
 0xe61   :  { %v2040_v5 = vsel %vm349_vm11, %v2038_v4, 0.0 }
 0xe62   :  { %2041 = vadd.xlane.f32.xlu0 %v2040_v5 }
 0xe66   :  { %2044 = vadd.xlane.f32.xlu0 %v2043_v8 }
 0xeeb   :  { %v2042_v24 = vpop.xlane.xlu0 %2041 }
 0xeec   :  { %v2046_v25 = vmul.f32 0.03125, %v2042_v24 }
 0xeee   :  { %v2048_v26 = vadd.f32 1e-12, %v2046_v25 }
 0xeef   :  { %v2045_v27 = vpop.xlane.xlu0 %2044 }
 0xef0   :  { %5076 = vrsqrt.f32 %v2048_v26  ;;  %v2047_v13 = vmul.f32 0.03125, %v2045_v27 }
 0xef2   :  { %v2049_v28 = vadd.f32 1e-12, %v2047_v13 }
 0xef4   :  { %5078 = vrsqrt.f32 %v2049_v28 }
 0xefd   :  { %v5077_v29 = vpop.eup %5076 }
 0xefe   :  { %v2052_v31 = vmul.f32 %v5077_v29, %v2036_v3 }
 0xf00   :  { %v2060_v33 = vmul.f32 %v4465_v30, %v2052_v31 }
 0xf01   :  { %v5079_v34 = vpop.eup %5078 }
 0xf02   :  { %v2053_v35 = vmul.f32 %v5079_v34, %v2037_v1  ;;  %v2068_v36 = vadd.f32 %v4466_v32, %v2060_v33 }
 0xf04   :  { %v2061_v11 = vmul.f32 %v4465_v30, %v2053_v35  ;;  %4837 = vmatprep.mubr.msk.f32.mxu1 %vm349_vm11, %v2068_v36  ;;  %v4480_v36 = vld [vmem:[%s6266_s6 + $0x38] sm:$0xff] }
 0xf05   :  { %4859 = vmatprep.subr.mxu1 %v4480_v36 }
 0xf06   :  { %v2069_v37 = vadd.f32 %v4466_v32, %v2061_v11  ;;  %v4479_v11 = vld [vmem:[%s6266_s6 + $0x30] sm:$0xff] }
 0xf08   :  { %4838 = vmatmul.mubr.msk.f32.vlgmr.msra.gmra.mxu1 %vm349_vm11, %v2069_v37  ;;  %v4478_v37 = vld [vmem:[%s6266_s6 + $0x28] sm:$0xff] }
 0xf09   :  { %4860 = vmatpush3.msra.mxu1 %v4480_v36 }
 0xf0a   :  { %4861 = vmatprep.subr.mxu1 %v4479_v11 }
 0xf0b   :  { %4862 = vmatpush3.msra.mxu1 %v4479_v11 }
 0xf0c   :  { %4863 = vmatprep.subr.mxu1 %v4478_v37 }
 0xf0d   :  { %4864 = vmatpush3.msra.mxu1 %v4478_v37 }
 0xf0e   :  { %4865 = vmatprep.subr.mxu1 %v4477_v38 }
 0xf0f   :  { %4866 = vmatpush3.msra.mxu1 %v4477_v38 }
 0xf10   :  { %4870 = vmatprep.subr.mxu1 %v4487_v39 }
 0xfc8   :  { %v4839_v43 = vpop.f32.mrf.mxu1 }
 0xfc9   :  { %v2159_v44 = vadd.f32 %v4839_v43, %v4467_v42 }
 0xfca   :  { %v2153_v45 = vpop.f32.mrf.mxu1 }
 0xfcb   :  { %v2154_v46 = vadd.f32 %v4467_v42, %v2153_v45  ;;  %v2163_v48 = vmax.f32 %v2159_v44, 0.0 }
 0xfcd   :  { %v2162_v47 = vmax.f32 %v2154_v46, 0.0 }
 0xfcf   :  { %4856 = vmatprep.mubr.msk.f32.mxu0 %vm2179_vm0, %v2162_v47  ;;  %v4475_v47 = vld [vmem:[#allocation8 + $0x1] ss:$0 sm:$0xff] }
 0xfd0   :  { %4857 = vmatmul.mubr.msk.f32.vlgmr.msra.gmra.mxu0 %vm2179_vm0, %v2163_v48 }
 0xfd1   :  { %4883 = vmatprep.mubr.msk.f32.mxu0 %vm5386_vm12, %v5385_v22 }
0x1090   :  { %v4858_v51 = vpop.f32.mrf.mxu0 }
0x1091   :  { %v2258_v16 = vadd.f32 %v4858_v51, %v4470_v49 }
0x1092   :  { %v2252_v53 = vpop.f32.mrf.mxu0 }
0x1093   :  { %v2253_v54 = vadd.f32 %v4470_v49, %v2252_v53  ;;  %v2266_v55 = vsel %vm349_vm11, %v2258_v16, 0.0  ;;  %v4476_v53 = vld [vmem:[#allocation10 + $0x1] ss:$0 sm:$0xff] }
0x1094   :  { %2267 = vadd.xlane.f32.xlu0 %v2266_v55 }
0x1095   :  { %v2263_v56 = vsel %vm349_vm11, %v2253_v54, 0.0 }
0x1096   :  { %2264 = vadd.xlane.f32.xlu1 %v2263_v56 }
0x111d   :  { %v2268_v50 = vpop.xlane.xlu0 %2267 }
0x111e   :  { %v2270_v57 = vmul.f32 0.03125, %v2268_v50  ;;  %v4486_v50 = vld [vmem:[%s6229_s9 + $0x30] sm:$0xff] }
0x111f   :  { %v2265_v58 = vpop.xlane.xlu1 %2264 }
0x1120   :  { %v2272_v59 = vsub.f32 %v2258_v16, %v2270_v57  ;;  %v2269_v60 = vmul.f32 0.03125, %v2265_v58  ;;  %v4485_v57 = vld [vmem:[%s6229_s9 + $0x28] sm:$0xff]  ;;  %v4484_v58 = vld [vmem:[%s6229_s9 + $0x20] sm:$0xff] }
0x1122   :  { %v2271_v61 = vsub.f32 %v2253_v54, %v2269_v60  ;;  %v2274_v15 = vmul.f32 %v2272_v59, %v2272_v59  ;;  %v4488_v60 = vld [vmem:[#allocation13 + $0x1] ss:$0 sm:$0xff] }
0x1124   :  { %v2278_v62 = vsel %vm349_vm11, %v2274_v15, 0.0  ;;  %v2273_v52 = vmul.f32 %v2271_v61, %v2271_v61  ;;  %v4481_v15 = vld [vmem:[#allocation11 + $0x1] ss:$0 sm:$0xff] }
0x1125   :  { %2279 = vadd.xlane.f32.xlu0 %v2278_v62 }
0x1126   :  { %v2275_v63 = vsel %vm349_vm11, %v2273_v52, 0.0 }
0x1127   :  { %2276 = vadd.xlane.f32.xlu1 %v2275_v63 }
0x11ae   :  { %v2280_v0 = vpop.xlane.xlu0 %2279 }
0x11af   :  { %v2282_v1 = vmul.f32 0.03125, %v2280_v0 }
0x11b0   :  { %v2277_v3 = vpop.xlane.xlu1 %2276 }
0x11b1   :  { %v2284_v4 = vadd.f32 1e-12, %v2282_v1  ;;  %v2281_v5 = vmul.f32 0.03125, %v2277_v3 }
0x11b3   :  { %5080 = vrsqrt.f32 %v2284_v4  ;;  %v2283_v7 = vadd.f32 1e-12, %v2281_v5 }
0x11b5   :  { %5082 = vrsqrt.f32 %v2283_v7 }
0x11c0   :  { %v5081_v8 = vpop.eup %5080 }
0x11c1   :  { %v2288_v10 = vmul.f32 %v5081_v8, %v2272_v59 }
0x11c2   :  { %v5083_v12 = vpop.eup %5082 }
0x11c3   :  { %v2296_v18 = vmul.f32 %v4473_v9, %v2288_v10  ;;  %v2287_v20 = vmul.f32 %v5083_v12, %v2271_v61 }
0x11c5   :  { %v2304_v21 = vadd.f32 %v4474_v14, %v2296_v18  ;;  %v2295_v23 = vmul.f32 %v4473_v9, %v2287_v20 }
0x11c7   :  { %v2312_v24 = vsel %vm349_vm11, %v2304_v21, 0.0  ;;  %v2303_v25 = vadd.f32 %v4474_v14, %v2295_v23 }
0x11c8   :  { %2313 = vadd.xlane.f32.xlu0 %v2312_v24 }
0x11c9   :  { %v2309_v26 = vsel %vm349_vm11, %v2303_v25, 0.0 }
0x11ca   :  { %2310 = vadd.xlane.f32.xlu1 %v2309_v26 }
0x1251   :  { %v2314_v27 = vpop.xlane.xlu0 %2313 }
0x1252   :  { %v2316_v13 = vmul.f32 0.03125, %v2314_v27 }
0x1253   :  { %v2311_v28 = vpop.xlane.xlu1 %2310 }
0x1254   :  { %v2318_v29 = vsub.f32 %v2304_v21, %v2316_v13  ;;  %v2315_v30 = vmul.f32 0.03125, %v2311_v28 }
0x1256   :  { %v2317_v31 = vsub.f32 %v2303_v25, %v2315_v30  ;;  %v2320_v32 = vmul.f32 %v2318_v29, %v2318_v29 }
0x1258   :  { %v2324_v33 = vsel %vm349_vm11, %v2320_v32, 0.0  ;;  %v2319_v34 = vmul.f32 %v2317_v31, %v2317_v31 }
0x1259   :  { %2325 = vadd.xlane.f32.xlu0 %v2324_v33 }
0x125a   :  { %v2321_v35 = vsel %vm349_vm11, %v2319_v34, 0.0 }
0x125b   :  { %2322 = vadd.xlane.f32.xlu1 %v2321_v35 }
0x12e2   :  { %v2326_v40 = vpop.xlane.xlu0 %2325 }
0x12e3   :  { %v2328_v41 = vmul.f32 0.03125, %v2326_v40 }
0x12e4   :  { %v2323_v42 = vpop.xlane.xlu1 %2322 }
0x12e5   :  { %v2330_v43 = vadd.f32 1e-12, %v2328_v41  ;;  %v2327_v44 = vmul.f32 0.03125, %v2323_v42 }
0x12e7   :  { %5084 = vrsqrt.f32 %v2330_v43  ;;  %v2329_v45 = vadd.f32 1e-12, %v2327_v44 }
0x12e9   :  { %5086 = vrsqrt.f32 %v2329_v45 }
0x12f4   :  { %v5085_v46 = vpop.eup %5084 }
0x12f5   :  { %v2334_v48 = vmul.f32 %v5085_v46, %v2318_v29 }
0x12f6   :  { %v5087_v49 = vpop.eup %5086 }
0x12f7   :  { %v2333_v51 = vmul.f32 %v5087_v49, %v2317_v31  ;;  %v2342_v16 = vmul.f32 %v4475_v47, %v2334_v48 }
0x12f9   :  { %v2341_v54 = vmul.f32 %v4475_v47, %v2333_v51  ;;  %v2350_v56 = vadd.f32 %v4476_v53, %v2342_v16 }
0x12fb   :  { %v2349_v55 = vadd.f32 %v4476_v53, %v2341_v54 }
0x12fd   :  { %4867 = vmatprep.mubr.msk.f32.mxu1 %vm349_vm11, %v2349_v55 }
0x12fe   :  { %4868 = vmatmul.mubr.msk.f32.vlgmr.msra.gmra.mxu1 %vm349_vm11, %v2350_v56 }
0x12ff   :  { %4871 = vmatpush3.msra.mxu1 %v4487_v39  ;;  %4878 = vmatprep.mubr.msk.f32.mxu1 %vm349_vm11, %v5638_v2 }
0x1300   :  { %4872 = vmatprep.subr.mxu1 %v4486_v50 }
0x1301   :  { %4873 = vmatpush3.msra.mxu1 %v4486_v50 }
0x1302   :  { %4874 = vmatprep.subr.mxu1 %v4485_v57 }
0x1303   :  { %4875 = vmatpush3.msra.mxu1 %v4485_v57 }
0x1304   :  { %4876 = vmatprep.subr.mxu1 %v4484_v58 }
0x1305   :  { %4877 = vmatpush3.msra.mxu1 %v4484_v58 }
0x1306   :  { %4879 = vmatmul.mubr.msk.f32.vlgmr.msra.gmra.mxu1 %vm349_vm11, %v5652_v6  ;;  %4886 = vmatprep.subr.mxu1 %v5385_v22 }
0x1307   :  { %4888 = vmatprep.mubr.msk.f32.mxu1 %vm5386_vm12, %v5385_v22 }
0x13be   :  { %v4869_v59 = vpop.f32.mrf.mxu1 }
0x13bf   :  { %v5958_v0 = vadd.f32 %v4869_v59, %v4481_v15 }
0x13c0   :  { %v2436_v2 = vpop.f32.mrf.mxu1 }
0x13c1   :  { %v5963_v6 = vadd.f32 %v4481_v15, %v2436_v2 }
0x13c6   :  { %v4880_v61 = vpop.f32.mrf.mxu1 }
0x13c7   :  { %v5952_v62 = vadd.f32 %v4880_v61, %v4488_v60 }
0x13c8   :  { %v2524_v52 = vpop.f32.mrf.mxu1 }
0x13c9   :  { %v5954_v63 = vadd.f32 %v4488_v60, %v2524_v52  ;;  %4887 = vmatpush3.xpose.msk.msra.mxu1 %vm577_vm13, %v5952_v62 }
0x13ca   :  { %4896 = vmatprep.subr.mxu1 %v5385_v22 }
0x13cb   :  { %4882 = vmatpush3.xpose.msk.msra.mxu0 %vm577_vm13, %v5954_v63 }
0x13cc   :  { %4889 = vmatmul.mubr.msk.f32.vlgmr.msra.gmra.mxu1 %vm577_vm13, %v5958_v0  ;;  %4891 = vmatprep.subr.mxu0 %v5385_v22 }
0x13cd   :  { %4898 = vmatprep.mubr.msk.f32.mxu1 %vm5386_vm12, %v5385_v22 }
0x13ce   :  { %4884 = vmatmul.mubr.msk.f32.vlgmr.msra.gmra.mxu0 %vm577_vm13, %v5963_v6 }
0x13cf   :  { %4893 = vmatprep.mubr.msk.f32.mxu0 %vm5386_vm12, %v5385_v22 }
0x148c   :  { %v2681_v1 = vpop.f32.mrf.mxu1 }
0x148d   :  { %v2686_v3 = vsel %vm5603_vm7, -1e+09, %v2681_v1 }
0x148e   :  { %v2605_v4 = vpop.f32.mrf.mxu0  ;;  %v4890_v5 = vpop.f32.mrf.mxu1  ;;  %v2690_v7 = vsel %vm577_vm13, %v2686_v3, -inf }
0x148f   :  { %v2685_v8 = vsel %vm5596_vm6, -1e+09, %v2605_v4  ;;  %2691 = vmax.xlane.f32.xlu0 %v2690_v7 }
0x1490   :  { %v4885_v9 = vpop.f32.mrf.mxu0  ;;  %v2687_v10 = vsel %vm577_vm13, %v2685_v8, -inf }
0x1491   :  { %2688 = vmax.xlane.f32.xlu1 %v2687_v10 }
0x14a2   :  { %2709 = vrot.lane.b32.xlu1 %v5954_v63, %s5387_s2 }
0x14a5   :  { %2785 = vrot.lane.b32.xlu0 %v5952_v62, %s5387_s2 }
0x14a6   :  { %2863 = vrot.lane.b32.xlu1 %v5954_v63, %s5388_s29 }
0x14aa   :  { %2941 = vrot.lane.b32.xlu1 %v5952_v62, %s5388_s29 }
0x1518   :  { %v2692_v12 = vpop.xlane.xlu0 %2691 }
0x1519   :  { %v2694_v14 = vsub.f32 %v2686_v3, %v2692_v12 }
0x151a   :  { %v2689_v18 = vpop.xlane.xlu1 %2688 }
0x151b   :  { %v2697_v20 = vmul.f32 1.442695, %v2694_v14  ;;  %v2693_v21 = vsub.f32 %v2685_v8, %v2689_v18 }
0x151c   :  { %v2786_v23 = vpop.permute.xlu0 %2785 }
0x151d   :  { %5088 = vpow2.f32 %v2697_v20  ;;  %v2695_v24 = vmul.f32 1.442695, %v2693_v21  ;;  %4897 = vmatpush3.msra.mxu1 %v2786_v23 }
0x151e   :  { %v2710_v25 = vpop.permute.xlu1 %2709  ;;  %4906 = vmatprep.subr.mxu1 %v5385_v22 }
0x151f   :  { %5090 = vpow2.f32 %v2695_v24  ;;  %4892 = vmatpush3.msra.mxu0 %v2710_v25 }
0x1520   :  { %4901 = vmatprep.subr.mxu0 %v5385_v22 }
0x1522   :  { %v2864_v29 = vpop.permute.xlu1 %2863 }
0x1526   :  { %v2942_v30 = vpop.permute.xlu1 %2941 }
0x152a   :  { %v5089_v26 = vpop.eup %5088 }
0x152b   :  { %v2702_v27 = vsel %vm577_vm13, %v5089_v26, 0.0 }
0x152c   :  { %v5091_v13 = vpop.eup %5090  ;;  %2703 = vadd.xlane.f32.xlu0 %v2702_v27 }
0x152d   :  { %v2699_v28 = vsel %vm577_vm13, %v5091_v13, 0.0 }
0x152e   :  { %2700 = vadd.xlane.f32.xlu1 %v2699_v28 }
0x153f   :  { %2939 = vrot.lane.b32.xlu1 %v5958_v0, %s5388_s29 }
0x1542   :  { %2861 = vrot.lane.b32.xlu0 %v5963_v6, %s5388_s29 }
0x15b5   :  { %v2704_v31 = vpop.xlane.xlu0 %2703 }
0x15b6   :  { %5092 = vrcp.f32 %v2704_v31 }
0x15b7   :  { %v2701_v32 = vpop.xlane.xlu1 %2700 }
0x15b8   :  { %5094 = vrcp.f32 %v2701_v32 }
0x15b9   :  { %v2862_v37 = vpop.permute.xlu0 %2861 }
0x15bb   :  { %v2940_v11 = vpop.permute.xlu1 %2939 }
0x15c3   :  { %v5093_v33 = vpop.eup %5092 }
0x15c4   :  { %v2708_v34 = vmul.f32 %v5093_v33, %v5089_v26 }
0x15c5   :  { %v5095_v35 = vpop.eup %5094 }
0x15c6   :  { %4899 = vmatmul.mubr.msk.f32.vlgmr.msra.gmra.mxu1 %vm577_vm13, %v2708_v34  ;;  %v2706_v36 = vmul.f32 %v5095_v35, %v5091_v13 }
0x15c7   :  { %4907 = vmatpush3.xpose.msk.msra.mxu1 %vm577_vm13, %v2942_v30  ;;  %4908 = vmatprep.mubr.msk.f32.mxu1 %vm5386_vm12, %v5385_v22 }
0x15c8   :  { %4894 = vmatmul.mubr.msk.f32.vlgmr.msra.gmra.mxu0 %vm577_vm13, %v2706_v36  ;;  %4916 = vmatprep.subr.mxu1 %v5385_v22 }
0x15c9   :  { %4902 = vmatpush3.xpose.msk.msra.mxu0 %vm577_vm13, %v2864_v29  ;;  %4903 = vmatprep.mubr.msk.f32.mxu0 %vm5386_vm12, %v5385_v22 }
0x15ca   :  { %4909 = vmatmul.mubr.msk.f32.vlgmr.msra.gmra.mxu1 %vm577_vm13, %v2940_v11  ;;  %4911 = vmatprep.subr.mxu0 %v5385_v22 }
0x15cb   :  { %4918 = vmatprep.mubr.msk.f32.mxu1 %vm5386_vm12, %v5385_v22 }
0x15cc   :  { %4904 = vmatmul.mubr.msk.f32.vlgmr.msra.gmra.mxu0 %vm577_vm13, %v2862_v37 }
0x15cd   :  { %4913 = vmatprep.mubr.msk.f32.mxu0 %vm5386_vm12, %v5385_v22 }
0x1686   :  { %v6012_v38 = vpop.f32.mrf.mxu1 }
0x1688   :  { %v6014_v39 = vpop.f32.mrf.mxu0  ;;  %v4900_v40 = vpop.f32.mrf.mxu1 }
0x168a   :  { %v4895_v41 = vpop.f32.mrf.mxu0  ;;  %v3013_v42 = vpop.f32.mrf.mxu1 }
0x168b   :  { %v3018_v43 = vsel %vm5603_vm7, -1e+09, %v3013_v42 }
0x168c   :  { %v2935_v44 = vpop.f32.mrf.mxu0  ;;  %v4910_v45 = vpop.f32.mrf.mxu1  ;;  %v3022_v46 = vsel %vm577_vm13, %v3018_v43, -inf }
0x168d   :  { %v3017_v47 = vsel %vm5596_vm6, -1e+09, %v2935_v44  ;;  %3023 = vmax.xlane.f32.xlu1 %v3022_v46 }
0x168e   :  { %v4905_v48 = vpop.f32.mrf.mxu0  ;;  %v3019_v49 = vsel %vm577_vm13, %v3017_v47, -inf }
0x168f   :  { %3020 = vmax.xlane.f32.xlu0 %v3019_v49 }
0x169e   :  { %3041 = vrot.lane.b32.xlu1 %v5954_v63, %s5389_s7 }
0x16a2   :  { %3195 = vrot.lane.b32.xlu1 %v5954_v63, %s5390_s4 }
0x16a6   :  { %3273 = vrot.lane.b32.xlu1 %v5952_v62, %s5390_s4 }
0x16aa   :  { %3271 = vrot.lane.b32.xlu1 %v5958_v0, %s5390_s4 }
0x1716   :  { %v3024_v51 = vpop.xlane.xlu1 %3023 }
0x1717   :  { %v3026_v16 = vsub.f32 %v3018_v43, %v3024_v51 }
0x1718   :  { %v3021_v53 = vpop.xlane.xlu0 %3020 }
0x1719   :  { %v3029_v54 = vmul.f32 1.442695, %v3026_v16  ;;  %v3025_v55 = vsub.f32 %v3017_v47, %v3021_v53 }
0x171a   :  { %v3042_v56 = vpop.permute.xlu1 %3041 }
0x171b   :  { %5096 = vpow2.f32 %v3029_v54  ;;  %v3027_v50 = vmul.f32 1.442695, %v3025_v55  ;;  %4912 = vmatpush3.msra.mxu0 %v3042_v56 }
0x171c   :  { %4921 = vmatprep.subr.mxu0 %v5385_v22 }
0x171d   :  { %5098 = vpow2.f32 %v3027_v50 }
0x171e   :  { %v3196_v15 = vpop.permute.xlu1 %3195 }
0x1722   :  { %v3274_v3 = vpop.permute.xlu1 %3273 }
0x1726   :  { %v3272_v8 = vpop.permute.xlu1 %3271 }
0x1728   :  { %v5097_v57 = vpop.eup %5096 }
0x1729   :  { %v3034_v58 = vsel %vm577_vm13, %v5097_v57, 0.0 }
0x172a   :  { %v5099_v59 = vpop.eup %5098  ;;  %3035 = vadd.xlane.f32.xlu0 %v3034_v58 }
0x172b   :  { %v3031_v2 = vsel %vm577_vm13, %v5099_v59, 0.0 }
0x172e   :  { %3032 = vadd.xlane.f32.xlu0 %v3031_v2 }
0x1744   :  { %3117 = vrot.lane.b32.xlu0 %v5952_v62, %s5389_s7 }
0x1748   :  { %3193 = vrot.lane.b32.xlu0 %v5963_v6, %s5390_s4 }
0x17b3   :  { %v3036_v60 = vpop.xlane.xlu0 %3035 }
0x17b4   :  { %5100 = vrcp.f32 %v3036_v60 }
0x17b7   :  { %v3033_v61 = vpop.xlane.xlu0 %3032 }
0x17b8   :  { %5102 = vrcp.f32 %v3033_v61 }
0x17bb   :  { %v3118_v52 = vpop.permute.xlu0 %3117 }
0x17bc   :  { %4917 = vmatpush3.msra.mxu1 %v3118_v52 }
0x17bd   :  { %4926 = vmatprep.subr.mxu1 %v5385_v22 }
0x17bf   :  { %v3194_v9 = vpop.permute.xlu0 %3193 }
0x17c1   :  { %v5101_v1 = vpop.eup %5100 }
0x17c2   :  { %v3040_v4 = vmul.f32 %v5101_v1, %v5097_v57 }
0x17c4   :  { %4919 = vmatmul.mubr.msk.f32.vlgmr.msra.gmra.mxu1 %vm577_vm13, %v3040_v4 }
0x17c5   :  { %v5103_v5 = vpop.eup %5102  ;;  %4927 = vmatpush3.xpose.msk.msra.mxu1 %vm577_vm13, %v3274_v3  ;;  %4928 = vmatprep.mubr.msk.f32.mxu1 %vm5386_vm12, %v5385_v22 }
0x17c6   :  { %v3038_v7 = vmul.f32 %v5103_v5, %v5099_v59  ;;  %4936 = vmatprep.subr.mxu1 %v5385_v22 }
0x17c8   :  { %4914 = vmatmul.mubr.msk.f32.vlgmr.msra.gmra.mxu0 %vm577_vm13, %v3038_v7  ;;  %4929 = vmatmul.mubr.msk.f32.vlgmr.msra.gmra.mxu1 %vm577_vm13, %v3272_v8 }
0x17c9   :  { %4922 = vmatpush3.xpose.msk.msra.mxu0 %vm577_vm13, %v3196_v15  ;;  %4923 = vmatprep.mubr.msk.f32.mxu0 %vm5386_vm12, %v5385_v22 }
0x17ca   :  { %4931 = vmatprep.subr.mxu0 %v5385_v22  ;;  %4938 = vmatprep.mubr.msk.f32.mxu1 %vm5386_vm12, %v5385_v22 }
0x17cc   :  { %4924 = vmatmul.mubr.msk.f32.vlgmr.msra.gmra.mxu0 %vm577_vm13, %v3194_v9 }
0x17cd   :  { %4933 = vmatprep.mubr.msk.f32.mxu0 %vm5386_vm12, %v5385_v22 }
0x1884   :  { %v6054_v10 = vpop.f32.mrf.mxu1 }
0x1886   :  { %v4920_v12 = vpop.f32.mrf.mxu1 }
0x1888   :  { %v6056_v14 = vpop.f32.mrf.mxu0  ;;  %v3345_v18 = vpop.f32.mrf.mxu1 }
0x1889   :  { %v3350_v20 = vsel %vm5603_vm7, -1e+09, %v3345_v18  ;;  %v4517_v18 = vld [vmem:[%s6231_s11 + $0x30] sm:$0xff] }
0x188a   :  { %v4915_v21 = vpop.f32.mrf.mxu0  ;;  %v4930_v23 = vpop.f32.mrf.mxu1  ;;  %v3354_v24 = vsel %vm577_vm13, %v3350_v20, -inf }
0x188b   :  { %3355 = vmax.xlane.f32.xlu1 %v3354_v24  ;;  %v4515_v21 = vld [vmem:[%s6231_s11 + $0x20] sm:$0xff] }
0x188c   :  { %v3267_v25 = vpop.f32.mrf.mxu0 }
0x188d   :  { %v3349_v26 = vsel %vm5596_vm6, -1e+09, %v3267_v25 }
0x188e   :  { %v4925_v27 = vpop.f32.mrf.mxu0  ;;  %v3351_v13 = vsel %vm577_vm13, %v3349_v26, -inf }
0x188f   :  { %3352 = vmax.xlane.f32.xlu0 %v3351_v13 }
0x189c   :  { %3373 = vrot.lane.b32.xlu1 %v5954_v63, %s5391_s24 }
0x18a0   :  { %3527 = vrot.lane.b32.xlu1 %v5954_v63, %s5392_s12 }
0x18a4   :  { %3605 = vrot.lane.b32.xlu1 %v5952_v62, %s5392_s12 }
0x18a8   :  { %3603 = vrot.lane.b32.xlu1 %v5958_v0, %s5392_s12 }
0x1914   :  { %v3356_v28 = vpop.xlane.xlu1 %3355 }
0x1915   :  { %v3358_v29 = vsub.f32 %v3350_v20, %v3356_v28  ;;  %v4516_v20 = vld [vmem:[%s6231_s11 + $0x28] sm:$0xff] }
0x1917   :  { %v3361_v30 = vmul.f32 1.442695, %v3358_v29 }
0x1918   :  { %v3374_v31 = vpop.permute.xlu1 %3373  ;;  %v3353_v32 = vpop.xlane.xlu0 %3352 }
0x1919   :  { %5104 = vpow2.f32 %v3361_v30  ;;  %v3357_v33 = vsub.f32 %v3349_v26, %v3353_v32  ;;  %4932 = vmatpush3.msra.mxu0 %v3374_v31 }
0x191a   :  { %4941 = vmatprep.subr.mxu0 %v5385_v22 }
0x191b   :  { %v3359_v34 = vmul.f32 1.442695, %v3357_v33 }
0x191c   :  { %v3528_v41 = vpop.permute.xlu1 %3527 }
0x191d   :  { %5106 = vpow2.f32 %v3359_v34 }
0x1920   :  { %v3606_v44 = vpop.permute.xlu1 %3605 }
0x1924   :  { %v3604_v47 = vpop.permute.xlu1 %3603 }
0x1926   :  { %v5105_v35 = vpop.eup %5104 }
0x1927   :  { %v3366_v36 = vsel %vm577_vm13, %v5105_v35, 0.0 }
0x1928   :  { %3367 = vadd.xlane.f32.xlu0 %v3366_v36 }
0x192a   :  { %v5107_v11 = vpop.eup %5106 }
0x192b   :  { %v3363_v37 = vsel %vm577_vm13, %v5107_v11, 0.0 }
0x192c   :  { %3364 = vadd.xlane.f32.xlu0 %v3363_v37  ;;  %v4519_v37 = vld [vmem:[#allocation14 + $0x1] ss:$0 sm:$0xff] }
0x1942   :  { %3449 = vrot.lane.b32.xlu0 %v5952_v62, %s5391_s24 }
0x1946   :  { %3525 = vrot.lane.b32.xlu0 %v5963_v6, %s5392_s12 }
0x19b1   :  { %v3368_v0 = vpop.xlane.xlu0 %3367 }
0x19b2   :  { %5108 = vrcp.f32 %v3368_v0 }
0x19b5   :  { %v3365_v40 = vpop.xlane.xlu0 %3364 }
0x19b6   :  { %5110 = vrcp.f32 %v3365_v40 }
0x19b9   :  { %v3450_v42 = vpop.permute.xlu0 %3449 }
0x19ba   :  { %4937 = vmatpush3.msra.mxu1 %v3450_v42 }
0x19bb   :  { %4946 = vmatprep.subr.mxu1 %v5385_v22 }
0x19bd   :  { %v3526_v48 = vpop.permute.xlu0 %3525 }
0x19bf   :  { %v5109_v43 = vpop.eup %5108 }
0x19c0   :  { %v3372_v45 = vmul.f32 %v5109_v43, %v5105_v35 }
0x19c2   :  { %4939 = vmatmul.mubr.msk.f32.vlgmr.msra.gmra.mxu1 %vm577_vm13, %v3372_v45 }
0x19c3   :  { %v5111_v46 = vpop.eup %5110  ;;  %4947 = vmatpush3.xpose.msk.msra.mxu1 %vm577_vm13, %v3606_v44  ;;  %4948 = vmatprep.mubr.msk.f32.mxu1 %vm5386_vm12, %v5385_v22 }
0x19c4   :  { %v3370_v6 = vmul.f32 %v5111_v46, %v5107_v11  ;;  %4956 = vmatprep.subr.mxu1 %v5385_v22 }
0x19c6   :  { %4934 = vmatmul.mubr.msk.f32.vlgmr.msra.gmra.mxu0 %vm577_vm13, %v3370_v6  ;;  %4949 = vmatmul.mubr.msk.f32.vlgmr.msra.gmra.mxu1 %vm577_vm13, %v3604_v47 }
0x19c7   :  { %4942 = vmatpush3.xpose.msk.msra.mxu0 %vm577_vm13, %v3528_v41  ;;  %4943 = vmatprep.mubr.msk.f32.mxu0 %vm5386_vm12, %v5385_v22 }
0x19c8   :  { %4951 = vmatprep.subr.mxu0 %v5385_v22  ;;  %4958 = vmatprep.mubr.msk.f32.mxu1 %vm5386_vm12, %v5385_v22 }
0x19ca   :  { %4944 = vmatmul.mubr.msk.f32.vlgmr.msra.gmra.mxu0 %vm577_vm13, %v3526_v48 }
0x19cb   :  { %4953 = vmatprep.mubr.msk.f32.mxu0 %vm5386_vm12, %v5385_v22 }
0x1a82   :  { %v3521_v49 = vpop.f32.mrf.mxu1 }
0x1a84   :  { %v4940_v51 = vpop.f32.mrf.mxu1 }
0x1a86   :  { %v3445_v16 = vpop.f32.mrf.mxu0  ;;  %v3677_v53 = vpop.f32.mrf.mxu1 }
0x1a87   :  { %v3682_v54 = vsel %vm5603_vm7, -1e+09, %v3677_v53  ;;  %v4528_v53 = vld [vmem:[%s6235_s15 + $0x38] sm:$0xff] }
0x1a88   :  { %v3686_v55 = vsel %vm577_vm13, %v3682_v54, -inf  ;;  %v4935_v56 = vpop.f32.mrf.mxu0  ;;  %v4950_v50 = vpop.f32.mrf.mxu1 }
0x1a89   :  { %3687 = vmax.xlane.f32.xlu1 %v3686_v55  ;;  %v4526_v55 = vld [vmem:[%s6235_s15 + $0x28] sm:$0xff]  ;;  %v4525_v56 = vld [vmem:[%s6235_s15 + $0x20] sm:$0xff]  ;;  %v4540_v50 = vld [vmem:[%s6237_s17 + $0x78] sm:$0xff] }
0x1a8a   :  { %v3599_v57 = vpop.f32.mrf.mxu0 }
0x1a8b   :  { %v3681_v58 = vsel %vm5596_vm6, -1e+09, %v3599_v57  ;;  %v4539_v57 = vld [vmem:[%s6237_s17 + $0x70] sm:$0xff] }
0x1a8c   :  { %v4945_v59 = vpop.f32.mrf.mxu0  ;;  %v3683_v2 = vsel %vm577_vm13, %v3681_v58, -inf }
0x1a8d   :  { %3684 = vmax.xlane.f32.xlu0 %v3683_v2  ;;  %v4537_v59 = vld [vmem:[%s6237_s17 + $0x60] sm:$0xff] }
0x1a9a   :  { %3705 = vrot.lane.b32.xlu1 %v5954_v63, %s5393_s30 }
0x1a9e   :  { %3859 = vrot.lane.b32.xlu1 %v6056_v14, %s5372_s5 }
0x1aa2   :  { %3861 = vrot.lane.b32.xlu1 %v6054_v10, %s5372_s5 }
0x1aa6   :  { %3869 = vrot.lane.b32.xlu1 %v3521_v49, %s5375_s3 }
0x1b12   :  { %v3688_v19 = vpop.xlane.xlu1 %3687 }
0x1b13   :  { %v3690_v22 = vsub.f32 %v3682_v54, %v3688_v19  ;;  %v4527_v54 = vld [vmem:[%s6235_s15 + $0x30] sm:$0xff] }
0x1b15   :  { %v3693_v60 = vmul.f32 1.442695, %v3690_v22 }
0x1b16   :  { %v3706_v17 = vpop.permute.xlu1 %3705  ;;  %v3685_v61 = vpop.xlane.xlu0 %3684 }
0x1b17   :  { %5112 = vpow2.f32 %v3693_v60  ;;  %v3689_v15 = vsub.f32 %v3681_v58, %v3685_v61  ;;  %4952 = vmatpush3.msra.mxu0 %v3706_v17  ;;  %v4538_v58 = vld [vmem:[%s6237_s17 + $0x68] sm:$0xff] }
0x1b19   :  { %v3691_v52 = vmul.f32 1.442695, %v3689_v15 }
0x1b1a   :  { %v3860_v27 = vpop.permute.xlu1 %3859 }
0x1b1b   :  { %5114 = vpow2.f32 %v3691_v52  ;;  %v3881_v30 = vsel %vm577_vm13, %v6014_v39, %v3860_v27  ;;  %v4523_v52 = vld [vmem:[#allocation16 + $0x1] ss:$0 sm:$0xff]  ;;  %v4542_v27 = vld [vmem:[%s6238_s18 + $0x1] ss:$0 sm:$0xff] }
0x1b1e   :  { %v3862_v13 = vpop.permute.xlu1 %3861 }
0x1b1f   :  { %v3882_v32 = vsel %vm577_vm13, %v6012_v38, %v3862_v13 }
0x1b22   :  { %v3870_v28 = vpop.permute.xlu1 %3869 }
0x1b23   :  { %v3884_v35 = vsel %vm1928_vm15, %v3882_v32, %v3870_v28 }
0x1b24   :  { %v5113_v1 = vpop.eup %5112 }
0x1b25   :  { %v3698_v63 = vsel %vm577_vm13, %v5113_v1, 0.0 }
0x1b26   :  { %3699 = vadd.xlane.f32.xlu0 %v3698_v63  ;;  %v4524_v63 = vld [vmem:[%s6234_s14 + $0x1] ss:$0 sm:$0xff] }
0x1b28   :  { %v5115_v3 = vpop.eup %5114 }
0x1b29   :  { %v3695_v4 = vsel %vm577_vm13, %v5115_v3, 0.0 }
0x1b2a   :  { %3696 = vadd.xlane.f32.xlu0 %v3695_v4 }
0x1b40   :  { %3781 = vrot.lane.b32.xlu0 %v5952_v62, %s5393_s30  ;;  %v4518_v62 = vld [vmem:[%s6231_s11 + $0x38] sm:$0xff] }
0x1b41   :  { %4961 = vmatprep.subr.mxu0 %v4518_v62 }
0x1b44   :  { %3867 = vrot.lane.b32.xlu0 %v3445_v16, %s5375_s3 }
0x1baf   :  { %v3700_v5 = vpop.xlane.xlu0 %3699 }
0x1bb0   :  { %5116 = vrcp.f32 %v3700_v5 }
0x1bb3   :  { %v3697_v7 = vpop.xlane.xlu0 %3696 }
0x1bb4   :  { %5118 = vrcp.f32 %v3697_v7 }
0x1bb7   :  { %v3782_v8 = vpop.permute.xlu0 %3781 }
0x1bb8   :  { %4957 = vmatpush3.msra.mxu1 %v3782_v8 }
0x1bb9   :  { %4972 = vmatprep.subr.mxu1 %v4528_v53 }
0x1bbb   :  { %v3868_v29 = vpop.permute.xlu0 %3867 }
0x1bbc   :  { %v3883_v33 = vsel %vm1928_vm15, %v3881_v30, %v3868_v29 }
0x1bbd   :  { %v5117_v9 = vpop.eup %5116 }
0x1bbe   :  { %v3704_v10 = vmul.f32 %v5117_v9, %v5113_v1 }
0x1bc0   :  { %4959 = vmatmul.mubr.msk.f32.vlgmr.msra.gmra.mxu1 %vm577_vm13, %v3704_v10  ;;  %v4536_v10 = vld [vmem:[%s6237_s17 + $0x58] sm:$0xff] }
0x1bc1   :  { %v5119_v12 = vpop.eup %5118  ;;  %4973 = vmatpush3.msra.mxu1 %v4528_v53 }
0x1bc2   :  { %v3702_v14 = vmul.f32 %v5119_v12, %v5115_v3  ;;  %4974 = vmatprep.subr.mxu1 %v4527_v54  ;;  %v4535_v12 = vld [vmem:[%s6237_s17 + $0x50] sm:$0xff] }
0x1bc3   :  { %4975 = vmatpush3.msra.mxu1 %v4527_v54 }
0x1bc4   :  { %4954 = vmatmul.mubr.msk.f32.vlgmr.msra.gmra.mxu0 %vm577_vm13, %v3702_v14  ;;  %4976 = vmatprep.subr.mxu1 %v4526_v55  ;;  %v4534_v14 = vld [vmem:[%s6237_s17 + $0x48] sm:$0xff] }
0x1bc5   :  { %4962 = vmatpush3.msra.mxu0 %v4518_v62  ;;  %4977 = vmatpush3.msra.mxu1 %v4526_v55  ;;  %v4533_v62 = vld [vmem:[%s6237_s17 + $0x40] sm:$0xff] }
0x1bc6   :  { %4963 = vmatprep.subr.mxu0 %v4517_v18  ;;  %4978 = vmatprep.subr.mxu1 %v4525_v56 }
0x1bc7   :  { %4964 = vmatpush3.msra.mxu0 %v4517_v18  ;;  %4979 = vmatpush3.msra.mxu1 %v4525_v56  ;;  %v4530_v18 = vld [vmem:[%s6236_s16 + $0x1] ss:$0 sm:$0xff] }
0x1bc8   :  { %4965 = vmatprep.subr.mxu0 %v4516_v20 }
0x1bc9   :  { %4966 = vmatpush3.msra.mxu0 %v4516_v20 }
0x1bca   :  { %4967 = vmatprep.subr.mxu0 %v4515_v21 }
0x1bcb   :  { %4968 = vmatpush3.msra.mxu0 %v4515_v21 }
0x1bcc   :  { %4983 = vmatprep.subr.mxu0 %v4540_v50 }
0x1c80   :  { %v3853_v23 = vpop.f32.mrf.mxu1 }
0x1c81   :  { %3877 = vrot.lane.b32.xlu1 %v3853_v23, %s5394_s0 }
0x1c82   :  { %v4960_v24 = vpop.f32.mrf.mxu1 }
0x1c84   :  { %v3777_v25 = vpop.f32.mrf.mxu0 }
0x1c85   :  { %3875 = vrot.lane.b32.xlu0 %v3777_v25, %s5394_s0 }
0x1c86   :  { %v4955_v26 = vpop.f32.mrf.mxu0 }
0x1cf3   :  { %v3878_v31 = vpop.permute.xlu1 %3877 }
0x1cf4   :  { %v3886_v11 = vsel %vm1931_vm14, %v3884_v35, %v3878_v31 }
0x1cf7   :  { %v3876_v34 = vpop.permute.xlu0 %3875 }
0x1cf8   :  { %v3885_v36 = vsel %vm1931_vm14, %v3883_v33, %v3876_v34 }
0x1cf9   :  { %4969 = vmatprep.mubr.msk.f32.mxu0 %vm349_vm11, %v3885_v36 }
0x1cfa   :  { %4970 = vmatmul.mubr.msk.f32.vlgmr.msra.gmra.mxu0 %vm349_vm11, %v3886_v11 }
0x1cfb   :  { %4984 = vmatpush3.msra.mxu0 %v4540_v50  ;;  %v4548_v50 = vld [vmem:[%s6240_s20 + $0x1] ss:$0 sm:$0xff] }
0x1cfc   :  { %4985 = vmatprep.subr.mxu0 %v4539_v57 }
0x1cfd   :  { %4986 = vmatpush3.msra.mxu0 %v4539_v57 }
0x1cfe   :  { %4987 = vmatprep.subr.mxu0 %v4538_v58 }
0x1cff   :  { %4988 = vmatpush3.msra.mxu0 %v4538_v58 }
0x1d00   :  { %4989 = vmatprep.subr.mxu0 %v4537_v59 }
0x1d01   :  { %4990 = vmatpush3.msra.mxu0 %v4537_v59 }
0x1d02   :  { %4991 = vmatprep.subr.mxu0 %v4536_v10 }
0x1d03   :  { %4992 = vmatpush3.msra.mxu0 %v4536_v10 }
0x1d04   :  { %4993 = vmatprep.subr.mxu0 %v4535_v12 }
0x1d05   :  { %4994 = vmatpush3.msra.mxu0 %v4535_v12 }
0x1d06   :  { %4995 = vmatprep.subr.mxu0 %v4534_v14 }
0x1d07   :  { %4996 = vmatpush3.msra.mxu0 %v4534_v14 }
0x1d08   :  { %4997 = vmatprep.subr.mxu0 %v4533_v62 }
0x1d09   :  { %4998 = vmatpush3.msra.mxu0 %v4533_v62 }
0x1dba   :  { %v4971_v0 = vpop.f32.mrf.mxu0 }
0x1dbb   :  { %v3978_v39 = vadd.f32 %v4971_v0, %v4519_v37 }
0x1dbc   :  { %v3972_v40 = vpop.f32.mrf.mxu0 }
0x1dbd   :  { %v3973_v41 = vadd.f32 %v4519_v37, %v3972_v40  ;;  %v3988_v38 = vsel %vm349_vm11, %v3978_v39, 0.0 }
0x1dbe   :  { %3989 = vadd.xlane.f32.xlu1 %v3988_v38  ;;  %v4270_v38 = vld [vmem:[#allocation17 + $0x18] sm:$0xff] }
0x1dbf   :  { %v3985_v42 = vsel %vm349_vm11, %v3973_v41, 0.0  ;;  %5002 = vmatprep.subr.mxu1 %v4270_v38 }
0x1dc0   :  { %3986 = vadd.xlane.f32.xlu0 %v3985_v42  ;;  %v4269_v42 = vld [vmem:[#allocation17 + $0x10] sm:$0xff] }
0x1e47   :  { %v3990_v43 = vpop.xlane.xlu1 %3989 }
0x1e48   :  { %v3992_v44 = vmul.f32 0.03125, %v3990_v43  ;;  %v4268_v43 = vld [vmem:[#allocation17 + $0x8] sm:$0xff] }
0x1e49   :  { %v3987_v45 = vpop.xlane.xlu0 %3986 }
0x1e4a   :  { %v3991_v46 = vmul.f32 0.03125, %v3987_v45  ;;  %v3994_v6 = vsub.f32 %v3978_v39, %v3992_v44  ;;  %v4267_v44 = vld [vmem:[#allocation17] sm:$0xff] }
0x1e4c   :  { %v3993_v47 = vsub.f32 %v3973_v41, %v3991_v46  ;;  %v3996_v51 = vmul.f32 %v3994_v6, %v3994_v6 }
0x1e4e   :  { %v3995_v48 = vmul.f32 %v3993_v47, %v3993_v47  ;;  %v4000_v16 = vsel %vm349_vm11, %v3996_v51, 0.0 }
0x1e50   :  { %v3997_v49 = vsel %vm349_vm11, %v3995_v48, 0.0 }
0x1e51   :  { %3998 = vadd.xlane.f32.xlu0 %v3997_v49 }
0x1e55   :  { %4001 = vadd.xlane.f32.xlu0 %v4000_v16  ;;  %v4547_v16 = vld [vmem:[%s6239_s19 + $0x1] ss:$0 sm:$0xff]  ;;  %s5395_s19 = smov [#allocation19]  }
0x1e56   :  { %s4408_s20 = sshll.u32 %s5395_s19, 4  ;;  %s4409_s20 = int_to_ptr.vmem [resolvable:$true] %s4408_s20 }
0x1e57   :  { %p5341_p9 = scmp.lt.s32.totalorder %s4409_s20, %s4409_s20 }
0x1eda   :  { %v3999_v2 = vpop.xlane.xlu0 %3998 }
0x1edb   :  { %v4003_v19 = vmul.f32 0.03125, %v3999_v2  ;;  %v4549_v2 = vld [vmem:[%s6242_s22] ss:$0 sm:$0xff]  ;;  %s5336_s22 = scalar_lea.vmem %s4409_s20, 256 }
0x1edc   :  { %p5337_p8 = scmp.ne.s32.totalorder %s4409_s20, %s5336_s22  ;;  %p5342_p10 = scmp.lt.s32.totalorder %s5336_s22, %s5336_s22 }
0x1edd   :  { %v4005_v22 = vadd.f32 1e-12, %v4003_v19 }
0x1ede   :  { %v4002_v60 = vpop.xlane.xlu0 %4001  ;;  %p5343_p11 = por %p5342_p10, %p5341_p9 }
0x1edf   :  { %5120 = vrsqrt.f32 %v4005_v22  ;;  %v4004_v17 = vmul.f32 0.03125, %v4002_v60 }
0x1ee0   :  { %p5344_p12 = pnand %p5343_p11, %p5337_p8 }
0x1ee1   :  { %v4006_v61 = vadd.f32 1e-12, %v4004_v17 }
0x1ee3   :  { %5122 = vrsqrt.f32 %v4006_v61 }
0x1eec   :  { %v5121_v15 = vpop.eup %5120 }
0x1eed   :  { %v4009_v1 = vmul.f32 %v5121_v15, %v3993_v47 }
0x1eef   :  { %v4017_v3 = vmul.f32 %v4523_v52, %v4009_v1 }
0x1ef0   :  { %v5123_v4 = vpop.eup %5122 }
0x1ef1   :  { %v4010_v5 = vmul.f32 %v5123_v4, %v3994_v6  ;;  %v4025_v7 = vadd.f32 %v4524_v63, %v4017_v3 }
0x1ef3   :  { %v4018_v8 = vmul.f32 %v4523_v52, %v4010_v5  ;;  %4980 = vmatprep.mubr.msk.f32.mxu1 %vm349_vm11, %v4025_v7 }
0x1ef5   :  { %v4026_v9 = vadd.f32 %v4524_v63, %v4018_v8 }
0x1ef7   :  { %4981 = vmatmul.mubr.msk.f32.vlgmr.msra.gmra.mxu1 %vm349_vm11, %v4026_v9 }
0x1ef8   :  { %5003 = vmatpush3.msra.mxu1 %v4270_v38 }
0x1ef9   :  { %5004 = vmatprep.subr.mxu1 %v4269_v42 }
0x1efa   :  { %5005 = vmatpush3.msra.mxu1 %v4269_v42 }
0x1efb   :  { %5006 = vmatprep.subr.mxu1 %v4268_v43 }
0x1efc   :  { %5007 = vmatpush3.msra.mxu1 %v4268_v43 }
0x1efd   :  { %5008 = vmatprep.subr.mxu1 %v4267_v44 }
0x1efe   :  { %5009 = vmatpush3.msra.mxu1 %v4267_v44 }
0x1fb7   :  { %v4982_v20 = vpop.f32.mrf.mxu1 }
0x1fb8   :  { %v4118_v21 = vadd.f32 %v4982_v20, %v4530_v18 }
0x1fb9   :  { %v4112_v23 = vpop.f32.mrf.mxu1 }
0x1fba   :  { %v4113_v24 = vadd.f32 %v4530_v18, %v4112_v23  ;;  %v4122_v26 = vmax.f32 %v4118_v21, 0.0 }
0x1fbc   :  { %v4121_v25 = vmax.f32 %v4113_v24, 0.0 }
0x1fbe   :  { %4999 = vmatprep.mubr.msk.f32.mxu0 %vm2179_vm0, %v4121_v25 }
0x1fbf   :  { %5000 = vmatmul.mubr.msk.f32.vlgmr.msra.gmra.mxu0 %vm2179_vm0, %v4122_v26 }
0x207f   :  { %v5001_v13 = vpop.f32.mrf.mxu0 }
0x2080   :  { %v4218_v28 = vadd.f32 %v5001_v13, %v4542_v27 }
0x2081   :  { %v4212_v29 = vpop.f32.mrf.mxu0 }
0x2082   :  { %v4213_v30 = vadd.f32 %v4542_v27, %v4212_v29  ;;  %v4228_v31 = vsel %vm349_vm11, %v4218_v28, 0.0 }
0x2083   :  { %4229 = vadd.xlane.f32.xlu0 %v4228_v31 }
0x2084   :  { %v4225_v32 = vsel %vm349_vm11, %v4213_v30, 0.0 }
0x2085   :  { %4226 = vadd.xlane.f32.xlu1 %v4225_v32 }
0x210c   :  { %v4230_v33 = vpop.xlane.xlu0 %4229 }
0x210d   :  { %v4232_v34 = vmul.f32 0.03125, %v4230_v33 }
0x210e   :  { %v4227_v35 = vpop.xlane.xlu1 %4226 }
0x210f   :  { %v4234_v36 = vsub.f32 %v4218_v28, %v4232_v34  ;;  %v4231_v11 = vmul.f32 0.03125, %v4227_v35 }
0x2111   :  { %v4233_v37 = vsub.f32 %v4213_v30, %v4231_v11  ;;  %v4236_v0 = vmul.f32 %v4234_v36, %v4234_v36 }
0x2113   :  { %v4240_v39 = vsel %vm349_vm11, %v4236_v0, 0.0  ;;  %v4235_v40 = vmul.f32 %v4233_v37, %v4233_v37 }
0x2114   :  { %4241 = vadd.xlane.f32.xlu0 %v4240_v39 }
0x2115   :  { %v4237_v41 = vsel %vm349_vm11, %v4235_v40, 0.0 }
0x2116   :  { %4238 = vadd.xlane.f32.xlu1 %v4237_v41 }
0x219d   :  { %v4242_v45 = vpop.xlane.xlu0 %4241 }
0x219e   :  { %v4244_v46 = vmul.f32 0.03125, %v4242_v45 }
0x219f   :  { %v4239_v6 = vpop.xlane.xlu1 %4238 }
0x21a0   :  { %v4246_v47 = vadd.f32 1e-12, %v4244_v46  ;;  %v4243_v48 = vmul.f32 0.03125, %v4239_v6 }
0x21a2   :  { %5124 = vrsqrt.f32 %v4246_v47  ;;  %v4245_v49 = vadd.f32 1e-12, %v4243_v48 }
0x21a4   :  { %5126 = vrsqrt.f32 %v4245_v49 }
0x21af   :  { %v5125_v51 = vpop.eup %5124 }
0x21b0   :  { %v4250_v53 = vmul.f32 %v5125_v51, %v4234_v36 }
0x21b1   :  { %v5127_v54 = vpop.eup %5126 }
0x21b2   :  { %v4249_v55 = vmul.f32 %v5127_v54, %v4233_v37  ;;  %v4258_v56 = vmul.f32 %v4547_v16, %v4250_v53 }
0x21b4   :  { %v4257_v57 = vmul.f32 %v4547_v16, %v4249_v55  ;;  %v4266_v59 = vadd.f32 %v4548_v50, %v4258_v56 }
0x21b6   :  { %v4265_v58 = vadd.f32 %v4548_v50, %v4257_v57 }
0x21b8   :  { %5010 = vmatprep.mubr.msk.f32.mxu1 %vm349_vm11, %v4265_v58 }
0x21b9   :  { %5011 = vmatmul.mubr.msk.f32.vlgmr.msra.gmra.mxu1 %vm349_vm11, %v4266_v59 }
0x2279   :  { %v5012_v19 = vpop.f32.mrf.mxu1 }
0x227a   :  { %v4356_v22 = vadd.f32 %v5012_v19, %v4549_v2 }
0x227b   :  { %v4350_v60 = vpop.f32.mrf.mxu1 }
0x227c   :  { %v4366_v17 = vsel %vm236_vm8, %v4356_v22, -inf  ;;  %v4351_v61 = vadd.f32 %v4549_v2, %v4350_v60 }
0x227d   :  { %v4367_v15 = vrot.slane %v4366_v17, 4 }
0x227e   :  { %v4359_v52 = vsel %vm236_vm8, %v4351_v61, -inf }
0x227f   :  { %v4368_v1 = vmax.f32 %v4366_v17, %v4367_v15  ;;  %v4360_v63 = vrot.slane %v4359_v52, 4 }
0x2281   :  { %v4369_v3 = vrot.slane %v4368_v1, 2  ;;  %v4361_v4 = vmax.f32 %v4359_v52, %v4360_v63 }
0x2283   :  { %v4370_v5 = vmax.f32 %v4368_v1, %v4369_v3  ;;  %v4362_v7 = vrot.slane %v4361_v4, 2 }
0x2285   :  { %v4371_v8 = vrot.slane %v4370_v5, 1  ;;  %v4363_v9 = vmax.f32 %v4361_v4, %v4362_v7 }
0x2287   :  { %v4372_v10 = vmax.f32 %v4370_v5, %v4371_v8  ;;  %v4364_v12 = vrot.slane %v4363_v9, 1 }
0x2289   :  { %v4374_v14 = vsub.f32 %v4356_v22, %v4372_v10  ;;  %v4365_v62 = vmax.f32 %v4363_v9, %v4364_v12 }
0x228b   :  { %v4377_v18 = vmul.f32 1.442695, %v4374_v14  ;;  %v4373_v20 = vsub.f32 %v4351_v61, %v4365_v62 }
0x228d   :  { %5128 = vpow2.f32 %v4377_v18  ;;  %v4375_v21 = vmul.f32 1.442695, %v4373_v20 }
0x228f   :  { %5130 = vpow2.f32 %v4375_v21 }
0x229a   :  { %v5129_v23 = vpop.eup %5128 }
0x229b   :  { %v4386_v24 = vsel %vm236_vm8, %v5129_v23, 0.0 }
0x229c   :  { %v5131_v25 = vpop.eup %5130  ;;  %v4387_v26 = vrot.slane %v4386_v24, 4 }
0x229d   :  { %v4379_v27 = vsel %vm236_vm8, %v5131_v25, 0.0 }
0x229e   :  { %v4388_v13 = vadd.f32 %v4387_v26, %v4386_v24  ;;  %v4380_v28 = vrot.slane %v4379_v27, 4 }
0x22a0   :  { %v4389_v29 = vrot.slane %v4388_v13, 2  ;;  %v4381_v30 = vadd.f32 %v4380_v28, %v4379_v27 }
0x22a2   :  { %v4390_v31 = vadd.f32 %v4389_v29, %v4388_v13  ;;  %v4382_v32 = vrot.slane %v4381_v30, 2 }
0x22a4   :  { %v4391_v33 = vrot.slane %v4390_v31, 1  ;;  %v4383_v34 = vadd.f32 %v4382_v32, %v4381_v30 }
0x22a6   :  { %v4392_v35 = vadd.f32 %v4391_v33, %v4390_v31  ;;  %v4384_v36 = vrot.slane %v4383_v34, 1 }
0x22a8   :  { %5132 = vlog2.f32 %v4392_v35  ;;  %v4385_v11 = vadd.f32 %v4384_v36, %v4383_v34 }
0x22aa   :  { %5134 = vlog2.f32 %v4385_v11 }
0x22b5   :  { %v5133_v37 = vpop.eup %5132 }
0x22b6   :  { %v4396_v0 = vmul.f32 0.6931472, %v5133_v37 }
0x22b7   :  { %v5135_v39 = vpop.eup %5134 }
0x22b8   :  { %v4398_v40 = vadd.f32 %v4396_v0, %v4372_v10  ;;  %v4394_v41 = vmul.f32 0.6931472, %v5135_v39 }
0x22ba   :  { %v4400_v38 = vsub.f32 %v4356_v22, %v4398_v40  ;;  %v4397_v42 = vadd.f32 %v4394_v41, %v4365_v62 }
0x22bc   :  { %4402 = vst.msk [vmem:[#allocation19 + $0x8] sm:$0xff] %vm236_vm8, %v4400_v38  ;;  %v4399_v43 = vsub.f32 %v4351_v61, %v4397_v42 }
0x22be   :  { %4401 = vst.msk [vmem:[#allocation19] sm:$0xff] %vm236_vm8, %v4399_v43 }
0x22bf   :  { %5347 = shalt.err (!%p5344_p12)
}
0x22c0   :  { %4414 = dma.vmem_to_hbm [thread:$0]  %s4409_s20, 256, %s6243_s23, [#allocation4], %s5371_s25, %s5371_s25, %s5372_s5  }
0x22c1   :  { %5368 = dma.done.wait [#allocation4], 256  }
0x22c2   :  { %5369 = vsyncadd [#allocation4], 4294967040 }
0x22c3   :  { %4418 = vsyncpa [#allocation3], 1 }
0x22c4   :  { %4419 = vsyncpa [#allocation6], 1 }
0x22c5   :  { %4420 = vsyncpa [#allocation9], 1 }
0x22c6   :  { %4421 = vsyncpa [#allocation12], 1 }
0x22c7   :  { %4422 = vsyncpa [#allocation15], 1 }
0x22c8   :  { %4423 = vsyncpa [#allocation18], 1 }
0x22c9   :  { %4424 = vsyncpa [#allocation4], 1 }

</bundles_post_ra>
